<compile_context>
chip_gen: v5e
topology: v5e:2x2
jax: 0.10.0
libtpu: 0.0.40
codegen_flags: <defaults>
</compile_context>

<pallas_src>
import jax
import jax.numpy as jnp
from jax.experimental import pallas as pl
from jax.experimental.pallas import tpu as pltpu

LANE = 128   # lane width of a vreg
SUB = 8      # sublane count of a vreg


def _round_up(n, m):
    return ((n + m - 1) // m) * m


def _gelu_exact(x):
    # nn.GELU() default (approximate='none'): 0.5 * x * (1 + erf(x / sqrt(2)))
    return 0.5 * x * (1.0 + jax.lax.erf(x * jnp.float32(0.7071067811865476)))


def _pad2(a, rows, cols):
    r, c = a.shape
    return jnp.zeros((rows, cols), a.dtype).at[:r, :c].set(a)


# ---------------------------------------------------------------------------
# Fused kernel: embed + GELU + masked mean-pool (accumulated over row tiles)
# + action head + RecNet (concat folded into split first layer).
# ---------------------------------------------------------------------------
def _csi_gan_kernel(x_ref, pool_ref, w_emb_ref, w_act_ref, w1f_ref, w1l_ref,
                    w2_ref, w3_ref, bias_ref, act_ref, dom_ref, feat_acc):
    r = pl.program_id(0)

    @pl.when(r == 0)
    def _():
        feat_acc[...] = jnp.zeros_like(feat_acc)

    # Embed + GELU on this tile of (B*S) rows; padded weight/bias columns are
    # zero, padded input rows are masked out by zeros in the pooling matrix.
    h = jnp.dot(x_ref[...], w_emb_ref[...],
                preferred_element_type=jnp.float32)
    h = _gelu_exact(h + bias_ref[0:1, :h.shape[1]])
    # Masked mean-pool as a matmul: pool[b, b*S + s] = 1/S (else 0).
    feat_acc[...] += jnp.dot(pool_ref[...], h,
                             preferred_element_type=jnp.float32)

    @pl.when(r == pl.num_programs(0) - 1)
    def _():
        feats = feat_acc[...]                                   # (B_pad, LP)
        logits = (jnp.dot(feats, w_act_ref[...],
                          preferred_element_type=jnp.float32)
                  + bias_ref[1:2, :act_ref.shape[1]])
        act_ref[...] = logits

        # RecNet, eval mode (Dropout = identity).  The [features, logits]
        # concat is folded into a split first layer (w1f rows <-> features,
        # w1l rows <-> logits, matching the concat order).
        h1 = (jnp.dot(feats, w1f_ref[...], preferred_element_type=jnp.float32)
              + jnp.dot(logits, w1l_ref[...],
                        preferred_element_type=jnp.float32)
              + bias_ref[2:3, :])
        h1 = _gelu_exact(h1)
        h2 = (jnp.dot(h1, w2_ref[...], preferred_element_type=jnp.float32)
              + bias_ref[3:4, :w2_ref.shape[1]])
        h2 = _gelu_exact(h2)
        dom_ref[...] = (jnp.dot(h2, w3_ref[...],
                                preferred_element_type=jnp.float32)
                        + bias_ref[4:5, :dom_ref.shape[1]])


# ---------------------------------------------------------------------------
# CSI_GAN forward (wrapper does all layout plumbing: flatten, pad, split w1,
# pack biases; then a single pallas_call).
# ---------------------------------------------------------------------------
def csi_gan_forward(x, fe_params, dn_params):
    B, S, d_in = x.shape
    d_llm = fe_params["w_emb"].shape[1]
    action_num = fe_params["w_act"].shape[1]
    domain_num = dn_params["w3"].shape[1]
    E = d_llm + action_num

    # Padded (lane-dense) dims.
    DP = _round_up(d_in, LANE)        # embed K
    LP = _round_up(d_llm, LANE)       # feature width
    AP = _round_up(action_num, LANE)  # action-logit width
    HP = _round_up(4 * E, LANE)       # RecNet hidden width
    EP = _round_up(E, LANE)           # RecNet bottleneck width
    OP = _round_up(domain_num, LANE)  # domain-logit width
    BP = _round_up(B, SUB)            # batch rows (sublane-aligned)

    R = B * S
    TR = LANE                          # row tile for the reduction grid axis
    RP = _round_up(R, TR)

    # ---- wrapper-side layout plumbing (free): flatten + zero-pad ----
    x2 = _pad2(x.reshape(R, d_in).astype(jnp.float32), RP, DP)

    # Pooling matrix: pool[b, b*S + s] = 1/S; zero elsewhere (masks padded
    # rows out of the mean and keeps padded batch rows at exactly zero).
    cols = jnp.arange(R)
    pool = jnp.zeros((BP, RP), jnp.float32).at[cols // S, cols].set(1.0 / S)

    w_emb = _pad2(fe_params["w_emb"], DP, LP)
    w_act = _pad2(fe_params["w_act"], LP, AP)
    # Split w1 so the [features, logits] concat never materializes.
    w1 = dn_params["w1"]
    w1f = _pad2(w1[:d_llm], LP, HP)
    w1l = _pad2(w1[d_llm:], AP, HP)
    w2 = _pad2(dn_params["w2"], HP, EP)
    w3 = _pad2(dn_params["w3"], EP, OP)

    # All biases consolidated into one lane-dense slab (single operand/DMA).
    bias = jnp.zeros((SUB, HP), jnp.float32)
    bias = bias.at[0, :d_llm].set(fe_params["b_emb"].reshape(-1))
    bias = bias.at[1, :action_num].set(fe_params["b_act"].reshape(-1))
    bias = bias.at[2, :4 * E].set(dn_params["b1"].reshape(-1))
    bias = bias.at[3, :E].set(dn_params["b2"].reshape(-1))
    bias = bias.at[4, :domain_num].set(dn_params["b3"].reshape(-1))

    const = lambda r: (0, 0)
    act_pad, dom_pad = pl.pallas_call(
        _csi_gan_kernel,
        out_shape=(jax.ShapeDtypeStruct((BP, AP), jnp.float32),
                   jax.ShapeDtypeStruct((BP, OP), jnp.float32)),
        grid_spec=pltpu.PrefetchScalarGridSpec(
            num_scalar_prefetch=0,
            grid=(RP // TR,),                       # reduction over row tiles
            in_specs=[
                pl.BlockSpec((TR, DP), lambda r: (r, 0)),   # x row tile
                pl.BlockSpec((BP, TR), lambda r: (0, r)),   # pool col tile
                pl.BlockSpec((DP, LP), const),              # w_emb
                pl.BlockSpec((LP, AP), const),              # w_act
                pl.BlockSpec((LP, HP), const),              # w1 (feature rows)
                pl.BlockSpec((AP, HP), const),              # w1 (logit rows)
                pl.BlockSpec((HP, EP), const),              # w2
                pl.BlockSpec((EP, OP), const),              # w3
                pl.BlockSpec((SUB, HP), const),             # packed biases
            ],
            out_specs=(pl.BlockSpec((BP, AP), const),
                       pl.BlockSpec((BP, OP), const)),
            scratch_shapes=[pltpu.VMEM((BP, LP), jnp.float32)],  # feats acc
        ),
        compiler_params=pltpu.CompilerParams(
            dimension_semantics=("arbitrary",)),    # reduction axis
    )(x2, pool, w_emb, w_act, w1f, w1l, w2, w3, bias)

    return act_pad[:B, :action_num], dom_pad[:B, :domain_num]


# ---------------------------------------------------------------------------
# Pure-JAX reference (for correctness check).
# ---------------------------------------------------------------------------
def _reference_forward(x, fe, dn):
    B, S, Din = x.shape
    h = _gelu_exact(x.reshape(B * S, Din) @ fe["w_emb"] + fe["b_emb"])
    feats = jnp.mean(h.reshape(B, S, -1), axis=1)
    logits = feats @ fe["w_act"] + fe["b_act"]
    z = jnp.concatenate([feats, logits], axis=-1)
    h1 = _gelu_exact(z @ dn["w1"] + dn["b1"])
    h2 = _gelu_exact(h1 @ dn["w2"] + dn["b2"])
    dom = h2 @ dn["w3"] + dn["b3"]
    return logits, dom


# ---------------------------------------------------------------------------
# Deterministic parameter init
# ---------------------------------------------------------------------------
def init_params(key, d_in, d_llm, action_num, domain_num):
    ks = jax.random.split(key, 6)
    scale = 0.02
    fe = {
        "w_emb": scale * jax.random.normal(ks[0], (d_in, d_llm), jnp.float32),
        "b_emb": jnp.zeros((1, d_llm), jnp.float32),
        "w_act": scale * jax.random.normal(ks[1], (d_llm, action_num), jnp.float32),
        "b_act": jnp.zeros((1, action_num), jnp.float32),
    }
    E = d_llm + action_num  # RecNet embed_size = d_llm + action_num
    dn = {
        "w1": scale * jax.random.normal(ks[2], (E, 4 * E), jnp.float32),
        "b1": jnp.zeros((1, 4 * E), jnp.float32),
        "w2": scale * jax.random.normal(ks[3], (4 * E, E), jnp.float32),
        "b2": jnp.zeros((1, E), jnp.float32),
        "w3": scale * jax.random.normal(ks[4], (E, domain_num), jnp.float32),
        "b3": jnp.zeros((1, domain_num), jnp.float32),
    }
    return fe, dn


if __name__ == "__main__":
    B, S, D_IN = 2, 8, 16          # small synthetic CSI: (batch, seq, subcarriers)
    D_LLM, ACTION_NUM, DOMAIN_NUM = 32, 4, 3

    key = jax.random.PRNGKey(0)
    k_x, k_p = jax.random.split(key)
    x = jax.random.normal(k_x, (B, S, D_IN), jnp.float32)
    fe_params, dn_params = init_params(k_p, D_IN, D_LLM, ACTION_NUM, DOMAIN_NUM)

    fwd = jax.jit(csi_gan_forward)
    action_logits, domain_logits = fwd(x, fe_params, dn_params)
    jax.block_until_ready((action_logits, domain_logits))

    assert action_logits.shape == (B, ACTION_NUM)
    assert domain_logits.shape == (B, DOMAIN_NUM)

    ref_act, ref_dom = _reference_forward(x, fe_params, dn_params)
    assert jnp.allclose(action_logits, ref_act, rtol=1e-2, atol=1e-3)
    assert jnp.allclose(domain_logits, ref_dom, rtol=1e-2, atol=1e-3)

    print("KERNEL_OK")
</pallas_src>

<mosaic_0001>
module attributes {stable_mosaic.version = 11 : i64} {
  func.func @_csi_gan_kernel(%arg0: i32, %arg1: memref<128x128xf32, #tpu.memory_space<vmem>>, %arg2: memref<8x128xf32, #tpu.memory_space<vmem>>, %arg3: memref<128x128xf32, #tpu.memory_space<vmem>>, %arg4: memref<128x128xf32, #tpu.memory_space<vmem>>, %arg5: memref<128x256xf32, #tpu.memory_space<vmem>>, %arg6: memref<128x256xf32, #tpu.memory_space<vmem>>, %arg7: memref<256x128xf32, #tpu.memory_space<vmem>>, %arg8: memref<128x128xf32, #tpu.memory_space<vmem>>, %arg9: memref<8x256xf32, #tpu.memory_space<vmem>>, %arg10: memref<8x128xf32, #tpu.memory_space<vmem>>, %arg11: memref<8x128xf32, #tpu.memory_space<vmem>>, %arg12: memref<8x128xf32, #tpu.memory_space<vmem>>) attributes {dimension_semantics = [#tpu.dimension_semantics<arbitrary>], iteration_bounds = array<i64: 1>, scalar_prefetch = 0 : i64, scratch_operands = 1 : i64, tpu.core_type = #tpu.core_type<tc>, window_params = [{transform_indices = @transform_0, window_bounds = array<i64: 128, 128>}, {transform_indices = @transform_1, window_bounds = array<i64: 8, 128>}, {pipeline_mode = #tpu.pipeline_mode<synchronous>, transform_indices = @transform_2, window_bounds = array<i64: 128, 128>}, {pipeline_mode = #tpu.pipeline_mode<synchronous>, transform_indices = @transform_3, window_bounds = array<i64: 128, 128>}, {pipeline_mode = #tpu.pipeline_mode<synchronous>, transform_indices = @transform_4, window_bounds = array<i64: 128, 256>}, {pipeline_mode = #tpu.pipeline_mode<synchronous>, transform_indices = @transform_5, window_bounds = array<i64: 128, 256>}, {pipeline_mode = #tpu.pipeline_mode<synchronous>, transform_indices = @transform_6, window_bounds = array<i64: 256, 128>}, {pipeline_mode = #tpu.pipeline_mode<synchronous>, transform_indices = @transform_7, window_bounds = array<i64: 128, 128>}, {pipeline_mode = #tpu.pipeline_mode<synchronous>, transform_indices = @transform_8, window_bounds = array<i64: 8, 256>}, {pipeline_mode = #tpu.pipeline_mode<synchronous>, transform_indices = @transform_9, window_bounds = array<i64: 8, 128>}, {pipeline_mode = #tpu.pipeline_mode<synchronous>, transform_indices = @transform_10, window_bounds = array<i64: 8, 128>}]} {
    %c0_i32 = arith.constant 0 : i32
    %0 = arith.cmpi eq, %arg0, %c0_i32 : i32
    %1 = arith.extui %0 : i1 to i32
    %c0_i32_0 = arith.constant 0 : i32
    %2 = arith.cmpi ne, %1, %c0_i32_0 : i32
    scf.if %2 {
      %cst_18 = arith.constant 0.000000e+00 : f32
      %25 = vector.broadcast %cst_18 : f32 to vector<8x128xf32>
      %c0_19 = arith.constant 0 : index
      %c0_20 = arith.constant 0 : index
      %26 = vector.load %arg12[%c0_19, %c0_20] : memref<8x128xf32, #tpu.memory_space<vmem>>, vector<8x128xf32>
      tpu.vector_store %arg12[%c0_19, %c0_20], %25 {strides = array<i32>} : memref<8x128xf32, #tpu.memory_space<vmem>>, vector<8x128xf32>,
    } else {
    }
    %c0 = arith.constant 0 : index
    %c0_1 = arith.constant 0 : index
    %3 = vector.load %arg1[%c0, %c0_1] : memref<128x128xf32, #tpu.memory_space<vmem>>, vector<128x128xf32>
    %c0_2 = arith.constant 0 : index
    %c0_3 = arith.constant 0 : index
    %4 = vector.load %arg3[%c0_2, %c0_3] : memref<128x128xf32, #tpu.memory_space<vmem>>, vector<128x128xf32>
    %cst = arith.constant dense<0.000000e+00> : vector<128x128xf32>
    %5 = tpu.matmul %3, %4, %cst {dimension_numbers = #tpu.dot_dimension_numbers<[1], [0], [0], [1], [0, 0, 1, 1], [], []>} : vector<128x128xf32>, vector<128x128xf32>, vector<128x128xf32> -> vector<128x128xf32>
    %c0_4 = arith.constant 0 : index
    %c0_5 = arith.constant 0 : index
    %6 = vector.load %arg9[%c0_4, %c0_5] : memref<8x256xf32, #tpu.memory_space<vmem>>, vector<1x128xf32>
    %7 = vector.broadcast %6 : vector<1x128xf32> to vector<128x128xf32>
    %8 = arith.addf %5, %7 : vector<128x128xf32>
    %cst_6 = arith.constant 5.000000e-01 : f32
    %9 = vector.broadcast %cst_6 : f32 to vector<128x128xf32>
    %10 = arith.mulf %9, %8 : vector<128x128xf32>
    %cst_7 = arith.constant 0.707106769 : f32
    %11 = vector.broadcast %cst_7 : f32 to vector<128x128xf32>
    %12 = arith.mulf %8, %11 : vector<128x128xf32>
    %13 = math.erf %12 : vector<128x128xf32>
    %cst_8 = arith.constant 1.000000e+00 : f32
    %14 = vector.broadcast %cst_8 : f32 to vector<128x128xf32>
    %15 = arith.addf %14, %13 : vector<128x128xf32>
    %16 = arith.mulf %10, %15 : vector<128x128xf32>
    %c0_9 = arith.constant 0 : index
    %c0_10 = arith.constant 0 : index
    %17 = vector.load %arg12[%c0_9, %c0_10] : memref<8x128xf32, #tpu.memory_space<vmem>>, vector<8x128xf32>
    %c0_11 = arith.constant 0 : index
    %c0_12 = arith.constant 0 : index
    %18 = vector.load %arg2[%c0_11, %c0_12] : memref<8x128xf32, #tpu.memory_space<vmem>>, vector<8x128xf32>
    %cst_13 = arith.constant dense<0.000000e+00> : vector<8x128xf32>
    %19 = tpu.matmul %18, %16, %cst_13 {dimension_numbers = #tpu.dot_dimension_numbers<[1], [0], [0], [1], [0, 0, 1, 1], [], []>} : vector<8x128xf32>, vector<128x128xf32>, vector<8x128xf32> -> vector<8x128xf32>
    %20 = arith.addf %17, %19 : vector<8x128xf32>
    %c0_14 = arith.constant 0 : index
    %c0_15 = arith.constant 0 : index
    %21 = vector.load %arg12[%c0_14, %c0_15] : memref<8x128xf32, #tpu.memory_space<vmem>>, vector<8x128xf32>
    tpu.vector_store %arg12[%c0_14, %c0_15], %20 {strides = array<i32>} : memref<8x128xf32, #tpu.memory_space<vmem>>, vector<8x128xf32>,
    %c0_i32_16 = arith.constant 0 : i32
    %22 = arith.cmpi eq, %arg0, %c0_i32_16 : i32
    %23 = arith.extui %22 : i1 to i32
    %c0_i32_17 = arith.constant 0 : i32
    %24 = arith.cmpi ne, %23, %c0_i32_17 : i32
    scf.if %24 {
      %c0_18 = arith.constant 0 : index
      %c0_19 = arith.constant 0 : index
      %25 = vector.load %arg12[%c0_18, %c0_19] : memref<8x128xf32, #tpu.memory_space<vmem>>, vector<8x128xf32>
      %c0_20 = arith.constant 0 : index
      %c0_21 = arith.constant 0 : index
      %26 = vector.load %arg4[%c0_20, %c0_21] : memref<128x128xf32, #tpu.memory_space<vmem>>, vector<128x128xf32>
      %cst_22 = arith.constant dense<0.000000e+00> : vector<8x128xf32>
      %27 = tpu.matmul %25, %26, %cst_22 {dimension_numbers = #tpu.dot_dimension_numbers<[1], [0], [0], [1], [0, 0, 1, 1], [], []>} : vector<8x128xf32>, vector<128x128xf32>, vector<8x128xf32> -> vector<8x128xf32>
      %c1 = arith.constant 1 : index
      %c0_23 = arith.constant 0 : index
      %28 = vector.load %arg9[%c1, %c0_23] : memref<8x256xf32, #tpu.memory_space<vmem>>, vector<1x128xf32>
      %29 = vector.broadcast %28 : vector<1x128xf32> to vector<8x128xf32>
      %30 = arith.addf %27, %29 : vector<8x128xf32>
      %c0_24 = arith.constant 0 : index
      %c0_25 = arith.constant 0 : index
      %31 = vector.load %arg10[%c0_24, %c0_25] : memref<8x128xf32, #tpu.memory_space<vmem>>, vector<8x128xf32>
      tpu.vector_store %arg10[%c0_24, %c0_25], %30 {strides = array<i32>} : memref<8x128xf32, #tpu.memory_space<vmem>>, vector<8x128xf32>,
      %c0_26 = arith.constant 0 : index
      %c0_27 = arith.constant 0 : index
      %32 = vector.load %arg5[%c0_26, %c0_27] : memref<128x256xf32, #tpu.memory_space<vmem>>, vector<128x256xf32>
      %cst_28 = arith.constant dense<0.000000e+00> : vector<8x256xf32>
      %33 = tpu.matmul %25, %32, %cst_28 {dimension_numbers = #tpu.dot_dimension_numbers<[1], [0], [0], [1], [0, 0, 1, 1], [], []>} : vector<8x128xf32>, vector<128x256xf32>, vector<8x256xf32> -> vector<8x256xf32>
      %c0_29 = arith.constant 0 : index
      %c0_30 = arith.constant 0 : index
      %34 = vector.load %arg6[%c0_29, %c0_30] : memref<128x256xf32, #tpu.memory_space<vmem>>, vector<128x256xf32>
      %cst_31 = arith.constant dense<0.000000e+00> : vector<8x256xf32>
      %35 = tpu.matmul %30, %34, %cst_31 {dimension_numbers = #tpu.dot_dimension_numbers<[1], [0], [0], [1], [0, 0, 1, 1], [], []>} : vector<8x128xf32>, vector<128x256xf32>, vector<8x256xf32> -> vector<8x256xf32>
      %36 = arith.addf %33, %35 : vector<8x256xf32>
      %c2 = arith.constant 2 : index
      %c0_32 = arith.constant 0 : index
      %37 = vector.load %arg9[%c2, %c0_32] : memref<8x256xf32, #tpu.memory_space<vmem>>, vector<1x256xf32>
      %38 = vector.broadcast %37 : vector<1x256xf32> to vector<8x256xf32>
      %39 = arith.addf %36, %38 : vector<8x256xf32>
      %cst_33 = arith.constant 5.000000e-01 : f32
      %40 = vector.broadcast %cst_33 : f32 to vector<8x256xf32>
      %41 = arith.mulf %40, %39 : vector<8x256xf32>
      %cst_34 = arith.constant 0.707106769 : f32
      %42 = vector.broadcast %cst_34 : f32 to vector<8x256xf32>
      %43 = arith.mulf %39, %42 : vector<8x256xf32>
      %44 = math.erf %43 : vector<8x256xf32>
      %cst_35 = arith.constant 1.000000e+00 : f32
      %45 = vector.broadcast %cst_35 : f32 to vector<8x256xf32>
      %46 = arith.addf %45, %44 : vector<8x256xf32>
      %47 = arith.mulf %41, %46 : vector<8x256xf32>
      %c0_36 = arith.constant 0 : index
      %c0_37 = arith.constant 0 : index
      %48 = vector.load %arg7[%c0_36, %c0_37] : memref<256x128xf32, #tpu.memory_space<vmem>>, vector<256x128xf32>
      %cst_38 = arith.constant dense<0.000000e+00> : vector<8x128xf32>
      %49 = tpu.matmul %47, %48, %cst_38 {dimension_numbers = #tpu.dot_dimension_numbers<[1], [0], [0], [1], [0, 0, 1, 1], [], []>} : vector<8x256xf32>, vector<256x128xf32>, vector<8x128xf32> -> vector<8x128xf32>
      %c3 = arith.constant 3 : index
      %c0_39 = arith.constant 0 : index
      %50 = vector.load %arg9[%c3, %c0_39] : memref<8x256xf32, #tpu.memory_space<vmem>>, vector<1x128xf32>
      %51 = vector.broadcast %50 : vector<1x128xf32> to vector<8x128xf32>
      %52 = arith.addf %49, %51 : vector<8x128xf32>
      %cst_40 = arith.constant 5.000000e-01 : f32
      %53 = vector.broadcast %cst_40 : f32 to vector<8x128xf32>
      %54 = arith.mulf %53, %52 : vector<8x128xf32>
      %cst_41 = arith.constant 0.707106769 : f32
      %55 = vector.broadcast %cst_41 : f32 to vector<8x128xf32>
      %56 = arith.mulf %52, %55 : vector<8x128xf32>
      %57 = math.erf %56 : vector<8x128xf32>
      %cst_42 = arith.constant 1.000000e+00 : f32
      %58 = vector.broadcast %cst_42 : f32 to vector<8x128xf32>
      %59 = arith.addf %58, %57 : vector<8x128xf32>
      %60 = arith.mulf %54, %59 : vector<8x128xf32>
      %c0_43 = arith.constant 0 : index
      %c0_44 = arith.constant 0 : index
      %61 = vector.load %arg8[%c0_43, %c0_44] : memref<128x128xf32, #tpu.memory_space<vmem>>, vector<128x128xf32>
      %cst_45 = arith.constant dense<0.000000e+00> : vector<8x128xf32>
      %62 = tpu.matmul %60, %61, %cst_45 {dimension_numbers = #tpu.dot_dimension_numbers<[1], [0], [0], [1], [0, 0, 1, 1], [], []>} : vector<8x128xf32>, vector<128x128xf32>, vector<8x128xf32> -> vector<8x128xf32>
      %c4 = arith.constant 4 : index
      %c0_46 = arith.constant 0 : index
      %63 = vector.load %arg9[%c4, %c0_46] : memref<8x256xf32, #tpu.memory_space<vmem>>, vector<1x128xf32>
      %64 = vector.broadcast %63 : vector<1x128xf32> to vector<8x128xf32>
      %65 = arith.addf %62, %64 : vector<8x128xf32>
      %c0_47 = arith.constant 0 : index
      %c0_48 = arith.constant 0 : index
      %66 = vector.load %arg11[%c0_47, %c0_48] : memref<8x128xf32, #tpu.memory_space<vmem>>, vector<8x128xf32>
      tpu.vector_store %arg11[%c0_47, %c0_48], %65 {strides = array<i32>} : memref<8x128xf32, #tpu.memory_space<vmem>>, vector<8x128xf32>,
    } else {
    }
    return
  }
  func.func @transform_0(%arg0: i32) -> (i32, i32) {
    %c0_i32 = arith.constant 0 : i32
    %c0_i32_0 = arith.constant 0 : i32
    return %arg0, %c0_i32 : i32, i32
  }
  func.func @transform_1(%arg0: i32) -> (i32, i32) {
    %c0_i32 = arith.constant 0 : i32
    %c0_i32_0 = arith.constant 0 : i32
    return %c0_i32, %arg0 : i32, i32
  }
  func.func @transform_2(%arg0: i32) -> (i32, i32) {
    %c0_i32 = arith.constant 0 : i32
    %c0_i32_0 = arith.constant 0 : i32
    %c0_i32_1 = arith.constant 0 : i32
    return %c0_i32, %c0_i32_0 : i32, i32
  }
  func.func @transform_3(%arg0: i32) -> (i32, i32) {
    %c0_i32 = arith.constant 0 : i32
    %c0_i32_0 = arith.constant 0 : i32
    %c0_i32_1 = arith.constant 0 : i32
    return %c0_i32, %c0_i32_0 : i32, i32
  }
  func.func @transform_4(%arg0: i32) -> (i32, i32) {
    %c0_i32 = arith.constant 0 : i32
    %c0_i32_0 = arith.constant 0 : i32
    %c0_i32_1 = arith.constant 0 : i32
    return %c0_i32, %c0_i32_0 : i32, i32
  }
  func.func @transform_5(%arg0: i32) -> (i32, i32) {
    %c0_i32 = arith.constant 0 : i32
    %c0_i32_0 = arith.constant 0 : i32
    %c0_i32_1 = arith.constant 0 : i32
    return %c0_i32, %c0_i32_0 : i32, i32
  }
  func.func @transform_6(%arg0: i32) -> (i32, i32) {
    %c0_i32 = arith.constant 0 : i32
    %c0_i32_0 = arith.constant 0 : i32
    %c0_i32_1 = arith.constant 0 : i32
    return %c0_i32, %c0_i32_0 : i32, i32
  }
  func.func @transform_7(%arg0: i32) -> (i32, i32) {
    %c0_i32 = arith.constant 0 : i32
    %c0_i32_0 = arith.constant 0 : i32
    %c0_i32_1 = arith.constant 0 : i32
    return %c0_i32, %c0_i32_0 : i32, i32
  }
  func.func @transform_8(%arg0: i32) -> (i32, i32) {
    %c0_i32 = arith.constant 0 : i32
    %c0_i32_0 = arith.constant 0 : i32
    %c0_i32_1 = arith.constant 0 : i32
    return %c0_i32, %c0_i32_0 : i32, i32
  }
  func.func @transform_9(%arg0: i32) -> (i32, i32) {
    %c0_i32 = arith.constant 0 : i32
    %c0_i32_0 = arith.constant 0 : i32
    %c0_i32_1 = arith.constant 0 : i32
    return %c0_i32, %c0_i32_0 : i32, i32
  }
  func.func @transform_10(%arg0: i32) -> (i32, i32) {
    %c0_i32 = arith.constant 0 : i32
    %c0_i32_0 = arith.constant 0 : i32
    %c0_i32_1 = arith.constant 0 : i32
    return %c0_i32, %c0_i32_0 : i32, i32
  }
}

</mosaic_0001>

<bundles_post_ra>
// kernel: csi_gan_forward.1
= control target key start
LH: loop header
LB: loop body
LE: loop exit
PB: predicated region body
PF: predicated region fallthrough
CT: control target
= control target key end

     0   :  { %s2678_s2 = inlined_call_operand.vmem [shape: f32[128,128], index: 2, kind: input, shape index: {}]   ;;  %s2679_s0 = inlined_call_operand.vmem [shape: f32[128,128], index: 0, kind: input, shape index: {}]   ;;  %s2680_s8 = inlined_call_operand.vmem [shape: f32[8,256], index: 8, kind: input, shape index: {}]   ;;  %s2681_s3 = inlined_call_operand.vmem [shape: f32[128,128], index: 3, kind: input, shape index: {}]   ;;  %s2682_s1 = inlined_call_operand.vmem [shape: f32[8,128], index: 1, kind: input, shape index: {}]   ;;  %s2683_s4 = inlined_call_operand.vmem [shape: f32[128,256], index: 4, kind: input, shape index: {}]   ;;  %s2684_s5 = inlined_call_operand.vmem [shape: f32[128,256], index: 5, kind: input, shape index: {}]   ;;  %s2685_s9 = inlined_call_operand.vmem [shape: f32[8,128], index: 9, kind: output, shape index: {0}]   ;;  %s2686_s6 = inlined_call_operand.vmem [shape: f32[256,128], index: 6, kind: input, shape index: {}]   ;;  %s2687_s7 = inlined_call_operand.vmem [shape: f32[128,128], index: 7, kind: input, shape index: {}]   ;;  %s2688_s10 = inlined_call_operand.vmem [shape: f32[8,128], index: 10, kind: output, shape index: {1}]  }
   0x1   :  { %v70_v0 = vld [vmem:[%s2678_s2 + $0x78] sm:$0xff]  ;;  %v69_v1 = vld [vmem:[%s2678_s2 + $0x70] sm:$0xff]  ;;  %v68_v2 = vld [vmem:[%s2678_s2 + $0x68] sm:$0xff] }
   0x2   :  { %72 = vmatpush.msra.mxu0 %v70_v0  ;;  %1331 = vmatpush.msra.mxu1 %v70_v0  ;;  %v67_v3 = vld [vmem:[%s2678_s2 + $0x60] sm:$0xff]  ;;  %v66_v4 = vld [vmem:[%s2678_s2 + $0x58] sm:$0xff]  ;;  %v65_v5 = vld [vmem:[%s2678_s2 + $0x50] sm:$0xff] }
   0x3   :  { %1332 = vmatpush.msra.mxu2 %v70_v0  ;;  %v64_v6 = vld [vmem:[%s2678_s2 + $0x48] sm:$0xff]  ;;  %v63_v7 = vld [vmem:[%s2678_s2 + $0x40] sm:$0xff]  ;;  %v62_v8 = vld [vmem:[%s2678_s2 + $0x38] sm:$0xff] }
   0x4   :  { %73 = vmatpush.msra.mxu0 %v69_v1  ;;  %1333 = vmatpush.msra.mxu1 %v69_v1  ;;  %v61_v9 = vld [vmem:[%s2678_s2 + $0x30] sm:$0xff]  ;;  %v60_v10 = vld [vmem:[%s2678_s2 + $0x28] sm:$0xff]  ;;  %v59_v11 = vld [vmem:[%s2678_s2 + $0x20] sm:$0xff] }
   0x5   :  { %1334 = vmatpush.msra.mxu2 %v69_v1  ;;  %v58_v12 = vld [vmem:[%s2678_s2 + $0x18] sm:$0xff]  ;;  %v57_v13 = vld [vmem:[%s2678_s2 + $0x10] sm:$0xff]  ;;  %v56_v14 = vld [vmem:[%s2678_s2 + $0x8] sm:$0xff] }
   0x6   :  { %74 = vmatpush.msra.mxu0 %v68_v2  ;;  %1335 = vmatpush.msra.mxu1 %v68_v2  ;;  %v55_v15 = vld [vmem:[%s2678_s2] sm:$0xff]  ;;  %v50_v17 = vld [vmem:[%s2679_s0 + $0x58] sm:$0xff]  ;;  %v40_v19 = vld [vmem:[%s2679_s0 + $0x8] sm:$0xff] }
   0x7   :  { %1336 = vmatpush.msra.mxu2 %v68_v2  ;;  %v39_v16 = vld [vmem:[%s2679_s0] sm:$0xff]  ;;  %v54_v18 = vld [vmem:[%s2679_s0 + $0x78] sm:$0xff]  ;;  %v41_v21 = vld [vmem:[%s2679_s0 + $0x10] sm:$0xff] }
   0x8   :  { %75 = vmatpush.msra.mxu0 %v67_v3  ;;  %1337 = vmatpush.msra.mxu1 %v67_v3  ;;  %v51_v20 = vld [vmem:[%s2679_s0 + $0x60] sm:$0xff]  ;;  %v52_v22 = vld [vmem:[%s2679_s0 + $0x68] sm:$0xff]  ;;  %v42_v23 = vld [vmem:[%s2679_s0 + $0x18] sm:$0xff] }
   0x9   :  { %1338 = vmatpush.msra.mxu2 %v67_v3  ;;  %v53_v24 = vld [vmem:[%s2679_s0 + $0x70] sm:$0xff]  ;;  %v43_v25 = vld [vmem:[%s2679_s0 + $0x20] sm:$0xff]  ;;  %v44_v26 = vld [vmem:[%s2679_s0 + $0x28] sm:$0xff] }
   0xa   :  { %76 = vmatpush.msra.mxu0 %v66_v4  ;;  %1339 = vmatpush.msra.mxu1 %v66_v4  ;;  %v45_v27 = vld [vmem:[%s2679_s0 + $0x30] sm:$0xff]  ;;  %v46_v28 = vld [vmem:[%s2679_s0 + $0x38] sm:$0xff]  ;;  %v47_v29 = vld [vmem:[%s2679_s0 + $0x40] sm:$0xff] }
   0xb   :  { %1340 = vmatpush.msra.mxu2 %v66_v4  ;;  %v48_v30 = vld [vmem:[%s2679_s0 + $0x48] sm:$0xff]  ;;  %v49_v31 = vld [vmem:[%s2679_s0 + $0x50] sm:$0xff]  ;;  %v1555_v32 = vld [vmem:[%s2680_s8] ss:$0 sm:$0xff] }
   0xc   :  { %77 = vmatpush.msra.mxu0 %v65_v5  ;;  %1341 = vmatpush.msra.mxu1 %v65_v5 }
   0xd   :  { %1342 = vmatpush.msra.mxu2 %v65_v5 }
   0xe   :  { %78 = vmatpush.msra.mxu0 %v64_v6  ;;  %1343 = vmatpush.msra.mxu1 %v64_v6 }
   0xf   :  { %1344 = vmatpush.msra.mxu2 %v64_v6 }
  0x10   :  { %79 = vmatpush.msra.mxu0 %v63_v7  ;;  %1345 = vmatpush.msra.mxu1 %v63_v7 }
  0x11   :  { %1346 = vmatpush.msra.mxu2 %v63_v7 }
  0x12   :  { %80 = vmatpush.msra.mxu0 %v62_v8  ;;  %1347 = vmatpush.msra.mxu1 %v62_v8 }
  0x13   :  { %1348 = vmatpush.msra.mxu2 %v62_v8 }
  0x14   :  { %81 = vmatpush.msra.mxu0 %v61_v9  ;;  %1349 = vmatpush.msra.mxu1 %v61_v9 }
  0x15   :  { %1350 = vmatpush.msra.mxu2 %v61_v9 }
  0x16   :  { %82 = vmatpush.msra.mxu0 %v60_v10  ;;  %1351 = vmatpush.msra.mxu1 %v60_v10 }
  0x17   :  { %1352 = vmatpush.msra.mxu2 %v60_v10 }
  0x18   :  { %83 = vmatpush.msra.mxu0 %v59_v11  ;;  %1353 = vmatpush.msra.mxu1 %v59_v11 }
  0x19   :  { %1354 = vmatpush.msra.mxu2 %v59_v11 }
  0x1a   :  { %84 = vmatpush.msra.mxu0 %v58_v12  ;;  %1355 = vmatpush.msra.mxu1 %v58_v12 }
  0x1b   :  { %1356 = vmatpush.msra.mxu2 %v58_v12 }
  0x1c   :  { %85 = vmatpush.msra.mxu0 %v57_v13  ;;  %1357 = vmatpush.msra.mxu1 %v57_v13 }
  0x1d   :  { %1358 = vmatpush.msra.mxu2 %v57_v13 }
  0x1e   :  { %86 = vmatpush.msra.mxu0 %v56_v14  ;;  %1359 = vmatpush.msra.mxu1 %v56_v14 }
  0x1f   :  { %1360 = vmatpush.msra.mxu2 %v56_v14 }
  0x20   :  { %87 = vmatpush.msra.mxu0 %v55_v15  ;;  %1361 = vmatpush.msra.mxu1 %v55_v15 }
  0x21   :  { %88 = vmatmul.f32.vlgmr.msra.gmra.mxu0 %v39_v16  ;;  %121 = vmatmul.f32.vlgmr.msra.gmra.mxu1 %v50_v17 }
  0x22   :  { %1362 = vmatpush.msra.mxu2 %v55_v15 }
  0x23   :  { %133 = vmatmul.f32.vlgmr.msra.gmra.mxu2 %v54_v18 }
  0x29   :  { %91 = vmatmul.f32.gmra.mxu0 %v40_v19  ;;  %124 = vmatmul.f32.gmra.mxu1 %v51_v20 }
  0x31   :  { %94 = vmatmul.f32.gmra.mxu0 %v41_v21  ;;  %127 = vmatmul.f32.gmra.mxu1 %v52_v22 }
  0x39   :  { %97 = vmatmul.f32.gmra.mxu0 %v42_v23  ;;  %130 = vmatmul.f32.gmra.mxu1 %v53_v24 }
  0x41   :  { %100 = vmatmul.f32.gmra.mxu0 %v43_v25 }
  0x49   :  { %103 = vmatmul.f32.gmra.mxu0 %v44_v26 }
  0x51   :  { %106 = vmatmul.f32.gmra.mxu0 %v45_v27 }
  0x59   :  { %109 = vmatmul.f32.gmra.mxu0 %v46_v28 }
  0x61   :  { %112 = vmatmul.f32.gmra.mxu0 %v47_v29 }
  0x69   :  { %115 = vmatmul.f32.gmra.mxu0 %v48_v30 }
  0x71   :  { %118 = vmatmul.f32.gmra.mxu0 %v49_v31 }
  0x9e   :  { %v89_v33 = vpop.f32.mrf.mxu0  ;;  %v122_v34 = vpop.f32.mrf.mxu1 }
  0x9f   :  { %v1558_v35 = vadd.f32 %v89_v33, %v1555_v32  ;;  %v1561_v36 = vadd.f32 %v122_v34, %v1555_v32 }
  0xa1   :  { %2697 = vst [vmem:[#allocation3_spill] sm:$0xff] %v1558_v35  ;;  %v1564_v37 = vmul.f32 0.70710677, %v1561_v36  ;;  %v1567_v38 = vmul.f32 0.70710677, %v1558_v35 }
  0xa3   :  { %2698 = vst [vmem:[#allocation4_spill] sm:$0xff] %v1567_v38  ;;  %v609_v39 = vmul.f32 %v1564_v37, %v1564_v37  ;;  %v169_v43 = vmul.f32 %v1567_v38, %v1567_v38 }
  0xa5   :  { %v1571_v40 = vmin.f32 %v609_v39, 16.0  ;;  %v1588_v52 = vmin.f32 %v169_v43, 16.0 }
  0xa6   :  { %v92_v41 = vpop.f32.mrf.mxu0  ;;  %v125_v42 = vpop.f32.mrf.mxu1 }
  0xa7   :  { %v611_v44 = vmul.f32 2.1237322e-06, %v1571_v40  ;;  %v126_v45 = vadd.f32 %v125_v42, %v1555_v32  ;;  %v134_v46 = vpop.f32.mrf.mxu2  ;;  %v1581_v49 = vadd.f32 %v92_v41, %v1555_v32  ;;  %v171_v60 = vmul.f32 2.1237322e-06, %v1588_v52 }
  0xa8   :  { %v1578_v47 = vadd.f32 %v134_v46, %v1555_v32 }
  0xa9   :  { %v612_v48 = vadd.f32 0.00028619796, %v611_v44  ;;  %2699 = vst [vmem:[#allocation5_spill] sm:$0xff] %v1581_v49  ;;  %v1583_v50 = vmul.f32 0.70710677, %v126_v45 }
  0xaa   :  { %v1586_v51 = vmul.f32 0.70710677, %v1578_v47  ;;  %v1596_v56 = vmul.f32 0.70710677, %v1581_v49  ;;  %v172_v7 = vadd.f32 0.00028619796, %v171_v60 }
  0xab   :  { %v613_v53 = vmul.f32 %v612_v48, %v1571_v40  ;;  %v649_v54 = vmul.f32 %v1583_v50, %v1583_v50 }
  0xac   :  { %v769_v55 = vmul.f32 %v1586_v51, %v1586_v51  ;;  %2700 = vst [vmem:[#allocation6_spill] sm:$0xff] %v1596_v56  ;;  %v209_v2 = vmul.f32 %v1596_v56, %v1596_v56  ;;  %v173_v16 = vmul.f32 %v172_v7, %v1588_v52 }
  0xad   :  { %v1598_v57 = vmin.f32 %v649_v54, 16.0  ;;  %v614_v63 = vadd.f32 0.0036580483, %v613_v53  ;;  %v1653_v54 = vmul.f32 0.5, %v1561_v36 }
  0xae   :  { %v95_v58 = vpop.f32.mrf.mxu0  ;;  %v128_v59 = vpop.f32.mrf.mxu1  ;;  %v1606_v1 = vmin.f32 %v769_v55, 16.0  ;;  %v1617_v9 = vmin.f32 %v209_v2, 16.0  ;;  %v174_v26 = vadd.f32 0.0036580483, %v173_v16  ;;  %v1655_v55 = vmul.f32 0.5, %v126_v45 }
  0xaf   :  { %v1602_v61 = vadd.f32 %v95_v58, %v1555_v32  ;;  %v129_v62 = vadd.f32 %v128_v59, %v1555_v32  ;;  %v651_v0 = vmul.f32 2.1237322e-06, %v1598_v57  ;;  %v615_v8 = vmul.f32 %v614_v63, %v1571_v40 }
  0xb0   :  { %v771_v3 = vmul.f32 2.1237322e-06, %v1606_v1  ;;  %v211_v19 = vmul.f32 2.1237322e-06, %v1617_v9  ;;  %v175_v42 = vmul.f32 %v174_v26, %v1588_v52 }
  0xb1   :  { %2701 = vst [vmem:[#allocation7_spill] sm:$0xff] %v1602_v61  ;;  %v652_v4 = vadd.f32 0.00028619796, %v651_v0  ;;  %v1612_v5 = vmul.f32 0.70710677, %v1602_v61  ;;  %v1670_v7 = vmul.f32 0.5, %v129_v62 }
  0xb2   :  { %v1614_v6 = vmul.f32 0.70710677, %v129_v62  ;;  %v772_v11 = vadd.f32 0.00028619796, %v771_v3  ;;  %v616_v17 = vadd.f32 0.05243302, %v615_v8 }
  0xb3   :  { %2702 = vst [vmem:[#allocation8_spill] sm:$0xff] %v1612_v5  ;;  %v653_v13 = vmul.f32 %v652_v4, %v1598_v57  ;;  %v249_v14 = vmul.f32 %v1612_v5, %v1612_v5  ;;  %v212_v28 = vadd.f32 0.00028619796, %v211_v19  ;;  %v782_v0 = vmul.f32 3.8918573e-05, %v1606_v1 }
  0xb4   :  { %v689_v10 = vmul.f32 %v1614_v6, %v1614_v6  ;;  %v773_v21 = vmul.f32 %v772_v11, %v1606_v1  ;;  %v617_v27 = vmul.f32 %v616_v17, %v1571_v40  ;;  %v1662_v2 = vadd.f32 0.05243302, %v175_v42 }
  0xb5   :  { %v654_v22 = vadd.f32 0.0036580483, %v653_v13  ;;  %v1630_v23 = vmin.f32 %v249_v14, 16.0  ;;  %v213_v44 = vmul.f32 %v212_v28, %v1617_v9  ;;  %v1666_v4 = vmul.f32 0.5, %v1578_v47 }
  0xb6   :  { %v98_v12 = vpop.f32.mrf.mxu0  ;;  %v1624_v15 = vmin.f32 %v689_v10, 16.0  ;;  %v131_v18 = vpop.f32.mrf.mxu1  ;;  %v774_v31 = vadd.f32 0.0036580483, %v773_v21  ;;  %v618_v43 = vadd.f32 0.18741608, %v617_v27  ;;  %2705 = vst [vmem:[#allocation11_spill] sm:$0xff] %v1662_v2 }
  0xb7   :  { %v1633_v25 = vadd.f32 %v131_v18, %v1555_v32  ;;  %v1638_v30 = vadd.f32 %v98_v12, %v1555_v32  ;;  %v655_v34 = vmul.f32 %v654_v22, %v1598_v57  ;;  %v251_v39 = vmul.f32 2.1237322e-06, %v1630_v23 }
  0xb8   :  { %v691_v20 = vmul.f32 2.1237322e-06, %v1624_v15  ;;  %v775_v58 = vmul.f32 %v774_v31, %v1606_v1  ;;  %v619_v3 = vmul.f32 %v618_v43, %v1571_v40  ;;  %v214_v45 = vadd.f32 0.0036580483, %v213_v44 }
  0xb9   :  { %2703 = vst [vmem:[#allocation9_spill] sm:$0xff] %v1638_v30  ;;  %v1643_v41 = vmul.f32 0.70710677, %v1633_v25  ;;  %v1648_v48 = vmul.f32 0.70710677, %v1638_v30 }
  0xba   :  { %v692_v24 = vadd.f32 0.00028619796, %v691_v20  ;;  %v656_v60 = vadd.f32 0.05243302, %v655_v34  ;;  %v252_v63 = vadd.f32 0.00028619796, %v251_v39  ;;  %v1688_v22 = vmul.f32 %v214_v45, %v1617_v9 }
  0xbb   :  { %2704 = vst [vmem:[#allocation10_spill] sm:$0xff] %v1648_v48  ;;  %v729_v53 = vmul.f32 %v1643_v41, %v1643_v41  ;;  %v289_v10 = vmul.f32 %v1648_v48, %v1648_v48  ;;  %v776_v11 = vadd.f32 0.05243302, %v775_v58  ;;  %v783_v62 = vadd.f32 0.001143296, %v782_v0 }
  0xbc   :  { %v693_v29 = vmul.f32 %v692_v24, %v1624_v15  ;;  %v657_v47 = vmul.f32 %v656_v60, %v1598_v57  ;;  %v253_v16 = vmul.f32 %v252_v63, %v1630_v23  ;;  %v620_v18 = vadd.f32 1.1283791, %v619_v3 }
  0xbd   :  { %v1668_v36 = vmin.f32 %v729_v53, 16.0  ;;  %v1690_v26 = vmin.f32 %v289_v10, 16.0  ;;  %v777_v28 = vmul.f32 %v776_v11, %v1606_v1 }
  0xbe   :  { %v101_v33 = vpop.f32.mrf.mxu0  ;;  %v694_v46 = vadd.f32 0.0036580483, %v693_v29  ;;  %v658_v34 = vadd.f32 0.18741608, %v657_v47  ;;  %v254_v39 = vadd.f32 0.0036580483, %v253_v16  ;;  %v1703_v44 = vmul.f32 %v620_v18, %v1564_v37 }
  0xbf   :  { %v1659_v59 = vadd.f32 %v101_v33, %v1555_v32  ;;  %v731_v12 = vmul.f32 2.1237322e-06, %v1668_v36  ;;  %v742_v21 = vmul.f32 3.8918573e-05, %v1668_v36  ;;  %v784_v33 = vmul.f32 %v783_v62, %v1606_v1 }
  0xc0   :  { %v695_v8 = vmul.f32 %v694_v46, %v1624_v15  ;;  %v291_v63 = vmul.f32 2.1237322e-06, %v1690_v26  ;;  %v778_v45 = vadd.f32 0.18741608, %v777_v28  ;;  %v702_v16 = vmul.f32 3.8918573e-05, %v1624_v15 }
  0xc1   :  { %v1677_v13 = vmul.f32 0.70710677, %v1659_v59  ;;  %v732_v19 = vadd.f32 0.00028619796, %v731_v12  ;;  %v743_v43 = vadd.f32 0.001143296, %v742_v21  ;;  %v659_v62 = vmul.f32 %v658_v34, %v1598_v57 }
  0xc2   :  { %v696_v24 = vadd.f32 0.05243302, %v695_v8  ;;  %v785_v58 = vadd.f32 0.014752088, %v784_v33 }
  0xc3   :  { %v329_v20 = vmul.f32 %v1677_v13, %v1677_v13  ;;  %v733_v29 = vmul.f32 %v732_v19, %v1668_v36  ;;  %v744_v3 = vmul.f32 %v743_v43, %v1668_v36 }
  0xc4   :  { %v697_v60 = vmul.f32 %v696_v24, %v1624_v15  ;;  %v786_v37 = vmul.f32 %v785_v58, %v1606_v1  ;;  %v292_v24 = vadd.f32 0.00028619796, %v291_v63 }
  0xc5   :  { %v1697_v31 = vmin.f32 %v329_v20, 16.0  ;;  %v734_v46 = vadd.f32 0.0036580483, %v733_v29  ;;  %v745_v47 = vadd.f32 0.014752088, %v744_v3 }
  0xc6   :  { %v104_v14 = vpop.f32.mrf.mxu0  ;;  %v787_v20 = vadd.f32 0.112945676, %v786_v37  ;;  %v698_v21 = vadd.f32 0.18741608, %v697_v60  ;;  %v703_v3 = vadd.f32 0.001143296, %v702_v16  ;;  %v293_v37 = vmul.f32 %v292_v24, %v1690_v26 }
  0xc7   :  { %v1682_v17 = vadd.f32 %v104_v14, %v1555_v32  ;;  %v331_v53 = vmul.f32 2.1237322e-06, %v1697_v31  ;;  %v735_v8 = vmul.f32 %v734_v46, %v1668_v36  ;;  %v746_v29 = vmul.f32 %v745_v47, %v1668_v36 }
  0xc8   :  { %v788_v46 = vmul.f32 %v787_v20, %v1606_v1 }
  0xc9   :  { %v1693_v27 = vmul.f32 0.70710677, %v1682_v17  ;;  %v332_v10 = vadd.f32 0.00028619796, %v331_v53  ;;  %v736_v18 = vadd.f32 0.05243302, %v735_v8  ;;  %v255_v53 = vmul.f32 %v254_v39, %v1630_v23 }
  0xca   :  { %v747_v58 = vadd.f32 0.112945676, %v746_v29  ;;  %v699_v39 = vmul.f32 %v698_v21, %v1624_v15 }
  0xcb   :  { %v369_v42 = vmul.f32 %v1693_v27, %v1693_v27  ;;  %v333_v19 = vmul.f32 %v332_v10, %v1697_v31  ;;  %v737_v33 = vmul.f32 %v736_v18, %v1668_v36  ;;  %v789_v10 = vadd.f32 0.4994258, %v788_v46 }
  0xcc   :  { %v748_v47 = vmul.f32 %v747_v58, %v1668_v36 }
  0xcd   :  { %v1708_v0 = vmin.f32 %v369_v42, 16.0  ;;  %v334_v42 = vadd.f32 0.0036580483, %v333_v19  ;;  %v738_v8 = vadd.f32 0.18741608, %v737_v33  ;;  %v790_v20 = vmul.f32 %v789_v10, %v1606_v1 }
  0xce   :  { %v107_v11 = vpop.f32.mrf.mxu0  ;;  %v749_v33 = vadd.f32 0.4994258, %v748_v47  ;;  %v294_v47 = vadd.f32 0.0036580483, %v293_v37 }
  0xcf   :  { %v371_v12 = vmul.f32 2.1237322e-06, %v1708_v0  ;;  %v1715_v14 = vadd.f32 %v107_v11, %v1555_v32  ;;  %v335_v60 = vmul.f32 %v334_v42, %v1697_v31  ;;  %v779_v11 = vmul.f32 %v778_v45, %v1606_v1 }
  0xd0   :  { %v704_v45 = vmul.f32 %v703_v3, %v1624_v15  ;;  %v739_v24 = vmul.f32 %v738_v8, %v1668_v36  ;;  %v791_v46 = vadd.f32 1.0, %v790_v20  ;;  %v750_v1 = vmul.f32 %v749_v33, %v1668_v36 }
  0xd1   :  { %v372_v28 = vadd.f32 0.00028619796, %v371_v12  ;;  %v1723_v43 = vmul.f32 0.70710677, %v1715_v14  ;;  %v336_v18 = vadd.f32 0.05243302, %v335_v60 }
  0xd2   :  { %1363 = vrcp.f32 %v791_v46  ;;  %v700_v3 = vadd.f32 1.1283791, %v699_v39  ;;  %v780_v8 = vadd.f32 1.1283791, %v779_v11  ;;  %v1756_v20 = vadd.f32 1.0, %v750_v1 }
  0xd3   :  { %v373_v34 = vmul.f32 %v372_v28, %v1708_v0  ;;  %v409_v63 = vmul.f32 %v1723_v43, %v1723_v43  ;;  %v337_v42 = vmul.f32 %v336_v18, %v1697_v31  ;;  %v1777_v1 = vmul.f32 %v294_v47, %v1690_v26 }
  0xd4   :  { %1365 = vrcp.f32 %v1756_v20  ;;  %vm797_vm0 = vweird.f32 %v791_v46  ;;  %vm757_vm3 = vweird.f32 %v1756_v20  ;;  %v761_v49 = vand.u32 2147483647, %v1756_v20 }
  0xd5   :  { %v374_v12 = vadd.f32 0.0036580483, %v373_v34  ;;  %v1735_v19 = vmin.f32 %v409_v63, 16.0  ;;  %v660_v34 = vadd.f32 1.1283791, %v659_v62  ;;  %v1751_v63 = vmul.f32 0.5, %v1633_v25 }
  0xd6   :  { %v110_v16 = vpop.f32.mrf.mxu0  ;;  %v338_v10 = vadd.f32 0.18741608, %v337_v42  ;;  %v1761_v25 = vadd.f32 0.05243302, %v255_v53  ;;  %v803_v53 = vand.u32 2147483648, %v791_v46  ;;  %v763_v5 = vand.u32 2147483648, %v1756_v20 }
  0xd7   :  { %v375_v28 = vmul.f32 %v374_v12, %v1708_v0  ;;  %v1740_v29 = vadd.f32 %v110_v16, %v1555_v32  ;;  %v411_v21 = vmul.f32 2.1237322e-06, %v1735_v19  ;;  %v740_v16 = vadd.f32 1.1283791, %v739_v24 }
  0xd8   :  { %v1759_v36 = vmul.f32 %v660_v34, %v1583_v50  ;;  %v339_v11 = vmul.f32 %v338_v10, %v1697_v31  ;;  %v781_v24 = vmul.f32 %v780_v8, %v1586_v51  ;;  %v1364_v34 = vpop.eup %1363  ;;  %v804_v47 = vor.u32 1.1754944e-38, %v803_v53 }
  0xd9   :  { %v376_v58 = vadd.f32 0.05243302, %v375_v28  ;;  %v1747_v60 = vmul.f32 0.70710677, %v1740_v29  ;;  %v412_v12 = vadd.f32 0.00028619796, %v411_v21  ;;  %v1780_v10 = vmul.f32 %v740_v16, %v1643_v41 }
  0xda   :  { %v705_v28 = vadd.f32 0.014752088, %v704_v45  ;;  %v801_v21 = vand.u32 2147483647, %v791_v46  ;;  %v793_v8 = vmul.f32 %v1364_v34, %v791_v46  ;;  %vm798_vm2 = vweird.f32 %v1364_v34  ;;  %v1366_v16 = vpop.eup %1365 }
  0xdb   :  { %v449_v18 = vmul.f32 %v1747_v60, %v1747_v60  ;;  %v413_v62 = vmul.f32 %v412_v12, %v1735_v19  ;;  %v377_v33 = vmul.f32 %v376_v58, %v1708_v0  ;;  %v1774_v58 = vmul.f32 %v700_v3, %v1614_v6  ;;  %vm1803_vm4 = vmor %vm797_vm0, %vm798_vm2 }
  0xdc   :  { %v706_v12 = vmul.f32 %v705_v28, %v1624_v15  ;;  %vm1789_vm1 = vcmp.eq.f32.partialorder %v801_v21, 8.507059e+37  ;;  %v794_v3 = vsub.f32 1.0, %v793_v8  ;;  %v753_v21 = vmul.f32 %v1366_v16, %v1756_v20 }
  0xdd   :  { %v1764_v42 = vmin.f32 %v449_v18, 16.0  ;;  %v414_v37 = vadd.f32 0.0036580483, %v413_v62  ;;  %v378_v18 = vadd.f32 0.18741608, %v377_v33  ;;  %vm758_vm5 = vweird.f32 %v1366_v16 }
  0xde   :  { %v113_v39 = vpop.f32.mrf.mxu0  ;;  %v1783_v62 = vadd.f32 1.1283791, %v339_v11  ;;  %v707_v33 = vadd.f32 0.112945676, %v706_v12  ;;  %v662_v11 = vmul.f32 3.8918573e-05, %v1598_v57  ;;  %vm1828_vm6 = vmor %vm757_vm3, %vm758_vm5 }
  0xdf   :  { %v451_v45 = vmul.f32 2.1237322e-06, %v1764_v42  ;;  %v1771_v50 = vadd.f32 %v113_v39, %v1555_v32  ;;  %v415_v39 = vmul.f32 %v414_v37, %v1735_v19  ;;  %v379_v48 = vmul.f32 %v378_v18, %v1708_v0 }
  0xe0   :  { %v708_v56 = vmul.f32 %v707_v33, %v1624_v15  ;;  %v663_v12 = vadd.f32 0.001143296, %v662_v11  ;;  %vm762_vm7 = vcmp.eq.f32.partialorder %v761_v49, 8.507059e+37  ;;  %v1855_v18 = vmul.f32 0.5, %v1740_v29 }
  0xe1   :  { %v452_v51 = vadd.f32 0.00028619796, %v451_v45  ;;  %v1787_v35 = vmul.f32 0.70710677, %v1771_v50  ;;  %v795_v45 = vmul.f32 %v1364_v34, %v794_v3  ;;  %v416_v38 = vadd.f32 0.05243302, %v415_v39 }
  0xe2   :  { %v754_v3 = vsub.f32 1.0, %v753_v21  ;;  %v664_v46 = vmul.f32 %v663_v12, %v1598_v57 }
  0xe3   :  { %v453_v41 = vmul.f32 %v452_v51, %v1764_v42  ;;  %v489_v28 = vmul.f32 %v1787_v35, %v1787_v35 }
  0xe4   :  { %v755_v2 = vmul.f32 %v1366_v16, %v754_v3  ;;  %v665_v6 = vadd.f32 0.014752088, %v664_v46 }
  0xe5   :  { %v454_v37 = vadd.f32 0.0036580483, %v453_v41  ;;  %v1800_v51 = vmin.f32 %v489_v28, 16.0  ;;  %v796_v41 = vadd.f32 %v1364_v34, %v795_v45  ;;  %v709_v28 = vadd.f32 0.4994258, %v708_v56 }
  0xe6   :  { %v116_v8 = vpop.f32.mrf.mxu0  ;;  %v417_v45 = vmul.f32 %v416_v38, %v1735_v19  ;;  %v756_v53 = vadd.f32 %v1366_v16, %v755_v2  ;;  %v666_v49 = vmul.f32 %v665_v6, %v1598_v57 }
  0xe7   :  { %v1809_v30 = vadd.f32 %v116_v8, %v1555_v32  ;;  %v491_v39 = vmul.f32 2.1237322e-06, %v1800_v51  ;;  %v455_v61 = vmul.f32 %v454_v37, %v1764_v42  ;;  %v800_v11 = vsel %vm1803_vm4, %v1364_v34, %v796_v41 }
  0xe8   :  { %v805_v8 = vsel %vm1789_vm1, %v804_v47, %v800_v11  ;;  %v764_v37 = vor.u32 1.1754944e-38, %v763_v5  ;;  %v710_v34 = vmul.f32 %v709_v28, %v1624_v15  ;;  %v418_v20 = vadd.f32 0.18741608, %v417_v45 }
  0xe9   :  { %v1817_v33 = vmul.f32 0.70710677, %v1809_v30  ;;  %v492_v21 = vadd.f32 0.00028619796, %v491_v39  ;;  %v806_v12 = vmul.f32 %v805_v8, %v781_v24  ;;  %v456_v47 = vadd.f32 0.05243302, %v455_v61 }
  0xea   :  { %v1836_v39 = vadd.f32 1.0, %v710_v34  ;;  %v380_v24 = vadd.f32 1.1283791, %v379_v48  ;;  %v760_v8 = vsel %vm1828_vm6, %v1366_v16, %v756_v53  ;;  %v667_v6 = vadd.f32 0.112945676, %v666_v49 }
  0xeb   :  { %v529_v56 = vmul.f32 %v1817_v33, %v1817_v33  ;;  %v493_v38 = vmul.f32 %v492_v21, %v1800_v51  ;;  %v1326_v3 = vclamps-f32 %v806_v12, 1.0  ;;  %v765_v21 = vsel %vm762_vm7, %v764_v37, %v760_v8 }
  0xec   :  { %v766_v2 = vmul.f32 %v765_v21, %v1780_v10  ;;  %1367 = vrcp.f32 %v1836_v39  ;;  %v457_v48 = vmul.f32 %v456_v47, %v1764_v42  ;;  %v1852_v12 = vadd.f32 0.05243302, %v1777_v1 }
  0xed   :  { %v1834_v41 = vmin.f32 %v529_v56, 16.0  ;;  %v494_v11 = vadd.f32 0.0036580483, %v493_v38  ;;  %v824_v28 = vadd.f32 1.0, %v1326_v3  ;;  %v622_v56 = vmul.f32 3.8918573e-05, %v1571_v40 }
  0xee   :  { %v119_v5 = vpop.f32.mrf.mxu0  ;;  %v1325_v37 = vclamps-f32 %v766_v2, 1.0  ;;  %v1865_v34 = vmul.f32 %v380_v24, %v1693_v27  ;;  %v419_v47 = vmul.f32 %v418_v20, %v1735_v19  ;;  %v458_v3 = vadd.f32 0.18741608, %v457_v48 }
  0xef   :  { %v531_v15 = vmul.f32 2.1237322e-06, %v1834_v41  ;;  %v495_v61 = vmul.f32 %v494_v11, %v1800_v51  ;;  %v1845_v46 = vadd.f32 %v119_v5, %v1555_v32  ;;  %v840_v16 = vmul.f32 %v824_v28, %v1666_v4 }
  0xf0   :  { %v1862_v32 = vmul.f32 %v1783_v62, %v1677_v13  ;;  %v1868_v4 = vmul.f32 0.5, %v1771_v50  ;;  %v823_v29 = vadd.f32 1.0, %v1325_v37  ;;  %v623_v62 = vadd.f32 0.001143296, %v622_v56 }
  0xf1   :  { %v532_v45 = vadd.f32 0.00028619796, %v531_v15  ;;  %v1858_v10 = vmul.f32 0.70710677, %v1845_v46  ;;  %843 = vmatpush.msrb.mxu1 %v840_v16  ;;  %v496_v38 = vadd.f32 0.05243302, %v495_v61  ;;  %vm717_vm8 = vweird.f32 %v1836_v39 }
  0xf2   :  { %v1368_v11 = vpop.eup %1367  ;;  %v839_v27 = vmul.f32 %v823_v29, %v1751_v63  ;;  %v668_v50 = vmul.f32 %v667_v6, %v1598_v57  ;;  %v721_v15 = vand.u32 2147483647, %v1836_v39  ;;  %v624_v20 = vmul.f32 %v623_v62, %v1571_v40 }
  0xf3   :  { %v533_v1 = vmul.f32 %v532_v45, %v1834_v41  ;;  %v569_v53 = vmul.f32 %v1858_v10, %v1858_v10  ;;  %v713_v5 = vmul.f32 %v1368_v11, %v1836_v39  ;;  %v497_v28 = vmul.f32 %v496_v38, %v1800_v51 }
  0xf4   :  { %844 = vmatpush.msrb.mxu1 %v839_v27  ;;  %v723_v63 = vand.u32 2147483648, %v1836_v39  ;;  %v669_v49 = vadd.f32 0.4994258, %v668_v50  ;;  %vm718_vm9 = vweird.f32 %v1368_v11  ;;  %v625_v48 = vadd.f32 0.014752088, %v624_v20 }
  0xf5   :  { %v534_v13 = vadd.f32 0.0036580483, %v533_v1  ;;  %v1875_v24 = vmin.f32 %v569_v53, 16.0  ;;  %v714_v2 = vsub.f32 1.0, %v713_v5  ;;  %v420_v45 = vadd.f32 1.1283791, %v419_v47  ;;  %vm1894_vm10 = vmor %vm717_vm8, %vm718_vm9 }
  0xf6   :  { %v670_v56 = vmul.f32 %v669_v49, %v1598_v57  ;;  %v382_v37 = vmul.f32 3.8918573e-05, %v1708_v0  ;;  %v459_v1 = vmul.f32 %v458_v3, %v1764_v42  ;;  %v626_v38 = vmul.f32 %v625_v48, %v1571_v40 }
  0xf7   :  { %v535_v8 = vmul.f32 %v534_v13, %v1834_v41  ;;  %v571_v21 = vmul.f32 2.1237322e-06, %v1875_v24  ;;  %v715_v29 = vmul.f32 %v1368_v11, %v714_v2  ;;  %v342_v53 = vmul.f32 3.8918573e-05, %v1697_v31 }
  0xf8   :  { %vm1898_vm11 = vcmp.eq.f32.partialorder %v721_v15, 8.507059e+37  ;;  %v724_v57 = vor.u32 1.1754944e-38, %v723_v63  ;;  %v671_v62 = vadd.f32 1.0, %v670_v56  ;;  %v498_v3 = vadd.f32 0.18741608, %v497_v28 }
  0xf9   :  { %v536_v61 = vadd.f32 0.05243302, %v535_v8  ;;  %v572_v16 = vadd.f32 0.00028619796, %v571_v21  ;;  %v716_v50 = vadd.f32 %v1368_v11, %v715_v29  ;;  %v627_v8 = vadd.f32 0.112945676, %v626_v38 }
  0xfa   :  { %v1904_v5 = vmul.f32 0.5, %v1809_v30  ;;  %1369 = vrcp.f32 %v671_v62  ;;  %v383_v39 = vadd.f32 0.001143296, %v382_v37  ;;  %v1907_v21 = vmul.f32 %v420_v45, %v1723_v43 }
  0xfb   :  { %v573_v6 = vmul.f32 %v572_v16, %v1875_v24  ;;  %v537_v27 = vmul.f32 %v536_v61, %v1834_v41  ;;  %v720_v15 = vsel %vm1894_vm10, %v1368_v11, %v716_v50  ;;  %v628_v63 = vmul.f32 %v627_v8, %v1571_v40 }
  0xfc   :  { %v343_v49 = vadd.f32 0.001143296, %v342_v53  ;;  %v1912_v28 = vadd.f32 1.1283791, %v459_v1  ;;  %v725_v30 = vsel %vm1898_vm11, %v724_v57, %v720_v15  ;;  %v582_v2 = vmul.f32 3.8918573e-05, %v1875_v24 }
  0xfd   :  { %v574_v20 = vadd.f32 0.0036580483, %v573_v6  ;;  %v499_v48 = vmul.f32 %v498_v3, %v1800_v51  ;;  %v538_v16 = vadd.f32 0.18741608, %v537_v27  ;;  %v726_v43 = vmul.f32 %v725_v30, %v1774_v58 }
  0xfe   :  { %v629_v45 = vadd.f32 0.4994258, %v628_v63  ;;  %v583_v11 = vadd.f32 0.001143296, %v582_v2  ;;  %v422_v37 = vmul.f32 3.8918573e-05, %v1735_v19  ;;  %v384_v1 = vmul.f32 %v383_v39, %v1708_v0 }
  0xff   :  { %v575_v61 = vmul.f32 %v574_v20, %v1875_v24  ;;  %v1324_v29 = vclamps-f32 %v726_v43, 1.0  ;;  %vm677_vm12 = vweird.f32 %v671_v62  ;;  %v344_v53 = vmul.f32 %v343_v49, %v1697_v31 }
 0x100   :  { %v630_v38 = vmul.f32 %v629_v45, %v1571_v40  ;;  %v1370_v6 = vpop.eup %1369  ;;  %v681_v13 = vand.u32 2147483647, %v671_v62  ;;  %v584_v47 = vmul.f32 %v583_v11, %v1875_v24  ;;  %v423_v57 = vadd.f32 0.001143296, %v422_v37 }
 0x101   :  { %v576_v56 = vadd.f32 0.05243302, %v575_v61  ;;  %v385_v3 = vadd.f32 0.014752088, %v384_v1  ;;  %v822_v58 = vadd.f32 1.0, %v1324_v29  ;;  %v673_v27 = vmul.f32 %v1370_v6, %v671_v62 }
 0x102   :  { %v683_v50 = vand.u32 2147483648, %v671_v62  ;;  %v1925_v8 = vadd.f32 1.0, %v630_v38  ;;  %v585_v39 = vadd.f32 0.014752088, %v584_v47  ;;  %v424_v15 = vmul.f32 %v423_v57, %v1735_v19 }
 0x103   :  { %v577_v20 = vmul.f32 %v576_v56, %v1875_v24  ;;  %v386_v40 = vmul.f32 %v385_v3, %v1708_v0  ;;  %v838_v63 = vmul.f32 %v822_v58, %v1670_v7  ;;  %v674_v49 = vsub.f32 1.0, %v673_v27 }
 0x104   :  { %vm678_vm13 = vweird.f32 %v1370_v6  ;;  %1371 = vrcp.f32 %v1925_v8  ;;  %v1932_v61 = vadd.f32 1.1283791, %v499_v48  ;;  %v1935_v30 = vmul.f32 0.5, %v1845_v46 }
 0x105   :  { %v586_v2 = vmul.f32 %v585_v39, %v1875_v24  ;;  %v345_v43 = vadd.f32 0.014752088, %v344_v53  ;;  %845 = vmatpush.msrb.mxu1 %v838_v63  ;;  %v675_v45 = vmul.f32 %v1370_v6, %v674_v49  ;;  %vm1938_vm14 = vcmp.eq.f32.partialorder %v681_v13, 8.507059e+37  ;;  %vm1944_vm15 = vmor %vm677_vm12, %vm678_vm13 }
 0x106   :  { %v684_v11 = vor.u32 1.1754944e-38, %v683_v50  ;;  %v425_v7 = vadd.f32 0.014752088, %v424_v15  ;;  %v539_v37 = vmul.f32 %v538_v16, %v1834_v41  ;;  %v578_v1 = vadd.f32 0.18741608, %v577_v20 }
 0x107   :  { %v587_v46 = vadd.f32 0.112945676, %v586_v2  ;;  %v387_v29 = vadd.f32 0.112945676, %v386_v40  ;;  %v676_v38 = vadd.f32 %v1370_v6, %v675_v45  ;;  %vm637_vm0 = vweird.f32 %v1925_v8 }
 0x108   :  { %v462_v53 = vmul.f32 3.8918573e-05, %v1764_v42  ;;  %v426_v13 = vmul.f32 %v425_v7, %v1735_v19  ;;  %v641_v47 = vand.u32 2147483647, %v1925_v8  ;;  %v643_v57 = vand.u32 2147483648, %v1925_v8 }
 0x109   :  { %v588_v16 = vmul.f32 %v587_v46, %v1875_v24  ;;  %v346_v62 = vmul.f32 %v345_v43, %v1697_v31  ;;  %v680_v58 = vsel %vm1944_vm15, %v1370_v6, %v676_v38  ;;  %v542_v27 = vmul.f32 3.8918573e-05, %v1834_v41 }
 0x10a   :  { %v1372_v3 = vpop.eup %1371  ;;  %v463_v50 = vadd.f32 0.001143296, %v462_v53  ;;  %v427_v20 = vadd.f32 0.112945676, %v426_v13  ;;  %v685_v39 = vsel %vm1938_vm14, %v684_v11, %v680_v58  ;;  %v388_v63 = vmul.f32 %v387_v29, %v1708_v0 }
 0x10b   :  { %v633_v15 = vmul.f32 %v1372_v3, %v1925_v8  ;;  %v589_v40 = vadd.f32 0.4994258, %v588_v16  ;;  %v686_v49 = vmul.f32 %v685_v39, %v1759_v36  ;;  %v543_v2 = vadd.f32 0.001143296, %v542_v27 }
 0x10c   :  { %v464_v43 = vmul.f32 %v463_v50, %v1764_v42  ;;  %v428_v45 = vmul.f32 %v427_v20, %v1735_v19  ;;  %vm638_vm1 = vweird.f32 %v1372_v3  ;;  %v644_v7 = vor.u32 1.1754944e-38, %v643_v57 }
 0x10d   :  { %v634_v6 = vsub.f32 1.0, %v633_v15  ;;  %v590_v48 = vmul.f32 %v589_v40, %v1875_v24  ;;  %v1323_v46 = vclamps-f32 %v686_v49, 1.0  ;;  %v544_v56 = vmul.f32 %v543_v2, %v1834_v41  ;;  %vm1972_vm2 = vmor %vm637_vm0, %vm638_vm1 }
 0x10e   :  { %v465_v11 = vadd.f32 0.014752088, %v464_v43  ;;  %v429_v38 = vadd.f32 0.4994258, %v428_v45  ;;  %v502_v36 = vmul.f32 3.8918573e-05, %v1800_v51  ;;  %v579_v15 = vmul.f32 %v578_v1, %v1875_v24 }
 0x10f   :  { %v635_v53 = vmul.f32 %v1372_v3, %v634_v6  ;;  %v1967_v13 = vadd.f32 1.0, %v590_v48  ;;  %v389_v29 = vadd.f32 0.4994258, %v388_v63  ;;  %v821_v16 = vadd.f32 1.0, %v1323_v46 }
 0x110   :  { %v545_v57 = vadd.f32 0.014752088, %v544_v56  ;;  %v466_v27 = vmul.f32 %v465_v11, %v1764_v42  ;;  %v430_v50 = vmul.f32 %v429_v38, %v1735_v19  ;;  %v540_v20 = vadd.f32 1.1283791, %v539_v37 }
 0x111   :  { %v636_v39 = vadd.f32 %v1372_v3, %v635_v53  ;;  %vm642_vm3 = vcmp.eq.f32.partialorder %v641_v47, 8.507059e+37  ;;  %1373 = vrcp.f32 %v1967_v13  ;;  %v837_v40 = vmul.f32 %v821_v16, %v1655_v55 }
 0x112   :  { %v546_v8 = vmul.f32 %v545_v57, %v1834_v41  ;;  %v503_v63 = vadd.f32 0.001143296, %v502_v36  ;;  %v467_v2 = vadd.f32 0.112945676, %v466_v27  ;;  %v1984_v43 = vadd.f32 1.0, %v430_v50 }
 0x113   :  { %v640_v49 = vsel %vm1972_vm2, %v1372_v3, %v636_v39  ;;  %v390_v19 = vmul.f32 %v389_v29, %v1708_v0  ;;  %846 = vmatpush.msrb.mxu1 %v837_v40  ;;  %v347_v6 = vadd.f32 0.112945676, %v346_v62  ;;  %v1990_v55 = vmul.f32 %v1912_v28, %v1747_v60 }
 0x114   :  { %v645_v37 = vsel %vm642_vm3, %v644_v7, %v640_v49  ;;  %v547_v47 = vadd.f32 0.112945676, %v546_v8  ;;  %v504_v45 = vmul.f32 %v503_v63, %v1800_v51  ;;  %v468_v1 = vmul.f32 %v467_v2, %v1764_v42 }
 0x115   :  { %v646_v24 = vmul.f32 %v645_v37, %v1703_v44  ;;  %1375 = vrcp.f32 %v1984_v43  ;;  %v1997_v3 = vmul.f32 %v1932_v61, %v1787_v35  ;;  %v2000_v0 = vmul.f32 %v540_v20, %v1817_v33 }
 0x116   :  { %v548_v7 = vmul.f32 %v547_v47, %v1834_v41  ;;  %v505_v62 = vadd.f32 0.014752088, %v504_v45  ;;  %v580_v46 = vadd.f32 1.1283791, %v579_v15  ;;  %v469_v28 = vadd.f32 0.4994258, %v468_v1 }
 0x117   :  { %v1374_v48 = vpop.eup %1373  ;;  %v1322_v60 = vclamps-f32 %v646_v24, 1.0  ;;  %v2003_v56 = vadd.f32 1.0, %v390_v19  ;;  %v348_v35 = vmul.f32 %v347_v6, %v1697_v31  ;;  %v601_v33 = vand.u32 2147483647, %v1967_v13 }
 0x118   :  { %v593_v44 = vmul.f32 %v1374_v48, %v1967_v13  ;;  %v549_v11 = vadd.f32 0.4994258, %v548_v7  ;;  %v506_v38 = vmul.f32 %v505_v62, %v1800_v51  ;;  %v603_v53 = vand.u32 2147483648, %v1967_v13 }
 0x119   :  { %v820_v61 = vadd.f32 1.0, %v1322_v60  ;;  %v470_v36 = vmul.f32 %v469_v28, %v1764_v42  ;;  %1377 = vrcp.f32 %v2003_v56  ;;  %vm598_vm4 = vweird.f32 %v1374_v48 }
 0x11a   :  { %v594_v29 = vsub.f32 1.0, %v593_v44  ;;  %v550_v16 = vmul.f32 %v549_v11, %v1834_v41  ;;  %v507_v58 = vadd.f32 0.112945676, %v506_v38  ;;  %v443_v20 = vand.u32 2147483648, %v1984_v43 }
 0x11b   :  { %v2013_v57 = vpop.eup %1375  ;;  %v836_v27 = vmul.f32 %v820_v61, %v1653_v54  ;;  %v2016_v50 = vadd.f32 1.0, %v470_v36  ;;  %v581_v40 = vmul.f32 %v580_v46, %v1858_v10  ;;  %v441_v54 = vand.u32 2147483647, %v1984_v43 }
 0x11c   :  { %v595_v39 = vmul.f32 %v1374_v48, %v594_v29  ;;  %v2019_v15 = vadd.f32 1.0, %v550_v16  ;;  %v508_v42 = vmul.f32 %v507_v58, %v1800_v51  ;;  %v433_v41 = vmul.f32 %v2013_v57, %v1984_v43 }
 0x11d   :  { %847 = vmatpush.msrb.mxu1 %v836_v27  ;;  %1379 = vrcp.f32 %v2016_v50  ;;  %v2028_v8 = vmul.f32 3.8918573e-05, %v1690_v26  ;;  %vm597_vm5 = vweird.f32 %v1967_v13  ;;  %vm602_vm6 = vcmp.eq.f32.partialorder %v601_v33, 8.507059e+37 }
 0x11e   :  { %v596_v63 = vadd.f32 %v1374_v48, %v595_v39  ;;  %1381 = vrcp.f32 %v2019_v15  ;;  %vm599_vm7 = vmor %vm597_vm5, %vm598_vm4  ;;  %v604_v49 = vor.u32 1.1754944e-38, %v603_v53  ;;  %v509_v2 = vadd.f32 0.4994258, %v508_v42 }
 0x11f   :  { %vm437_vm8 = vweird.f32 %v1984_v43  ;;  %v349_v10 = vadd.f32 0.4994258, %v348_v35  ;;  %v2034_v19 = vpop.eup %1377  ;;  %v434_v47 = vsub.f32 1.0, %v433_v41  ;;  %v444_v45 = vor.u32 1.1754944e-38, %v443_v20 }
 0x120   :  { %v600_v37 = vsel %vm599_vm7, %v1374_v48, %v596_v63  ;;  %v401_v6 = vand.u32 2147483647, %v2003_v56  ;;  %v510_v13 = vmul.f32 %v509_v2, %v1800_v51  ;;  %v481_v1 = vand.u32 2147483647, %v2016_v50 }
 0x121   :  { %v605_v24 = vsel %vm602_vm6, %v604_v49, %v600_v37  ;;  %vm2039_vm9 = vcmp.eq.f32.partialorder %v441_v54, 8.507059e+37  ;;  %v393_v62 = vmul.f32 %v2034_v19, %v2003_v56  ;;  %vm397_vm10 = vweird.f32 %v2003_v56 }
 0x122   :  { %v606_v46 = vmul.f32 %v605_v24, %v581_v40  ;;  %vm477_vm11 = vweird.f32 %v2016_v50  ;;  %v483_v48 = vand.u32 2147483648, %v2016_v50  ;;  %v435_v60 = vmul.f32 %v2013_v57, %v434_v47 }
 0x123   :  { %v1380_v28 = vpop.eup %1379  ;;  %vm557_vm12 = vweird.f32 %v2019_v15  ;;  %v561_v51 = vand.u32 2147483647, %v2019_v15  ;;  %v2051_v44 = vadd.f32 1.0, %v510_v13  ;;  %vm438_vm13 = vweird.f32 %v2013_v57 }
 0x124   :  { %v394_v11 = vsub.f32 1.0, %v393_v62  ;;  %v1382_v38 = vpop.eup %1381  ;;  %v1321_v35 = vclamps-f32 %v606_v46, 1.0  ;;  %v563_v61 = vand.u32 2147483648, %v2019_v15  ;;  %v473_v33 = vmul.f32 %v1380_v28, %v2016_v50  ;;  %vm2066_vm15 = vmor %vm437_vm8, %vm438_vm13 }
 0x125   :  { %v436_v53 = vadd.f32 %v2013_v57, %v435_v60  ;;  %v553_v36 = vmul.f32 %v1382_v38, %v2019_v15  ;;  %1383 = vrcp.f32 %v2051_v44  ;;  %vm2059_vm14 = vcmp.eq.f32.partialorder %v481_v1, 8.507059e+37 }
 0x126   :  { %v350_v16 = vmul.f32 %v349_v10, %v1697_v31  ;;  %v819_v58 = vadd.f32 1.0, %v1321_v35  ;;  %v474_v27 = vsub.f32 1.0, %v473_v33  ;;  %v484_v20 = vor.u32 1.1754944e-38, %v483_v48 }
 0x127   :  { %vm398_vm0 = vweird.f32 %v2034_v19  ;;  %v554_v42 = vsub.f32 1.0, %v553_v36  ;;  %v440_v41 = vsel %vm2066_vm15, %v2013_v57, %v436_v53  ;;  %v395_v40 = vmul.f32 %v2034_v19, %v394_v11 }
 0x128   :  { %v403_v31 = vand.u32 2147483648, %v2003_v56  ;;  %v835_v54 = vmul.f32 %v819_v58, %v1935_v30  ;;  %vm2077_vm1 = vcmp.eq.f32.partialorder %v561_v51, 8.507059e+37  ;;  %v475_v43 = vmul.f32 %v1380_v28, %v474_v27  ;;  %vm2091_vm4 = vmor %vm397_vm10, %vm398_vm0 }
 0x129   :  { %vm478_vm2 = vweird.f32 %v1380_v28  ;;  %v555_v49 = vmul.f32 %v1382_v38, %v554_v42  ;;  %vm558_vm3 = vweird.f32 %v1382_v38  ;;  %v396_v2 = vadd.f32 %v2034_v19, %v395_v40 }
 0x12a   :  { %v2082_v10 = vadd.f32 1.0, %v350_v16  ;;  %848 = vmatpush.msrb.mxu1 %v835_v54  ;;  %v564_v57 = vor.u32 1.1754944e-38, %v563_v61  ;;  %v521_v37 = vand.u32 2147483647, %v2051_v44  ;;  %v476_v47 = vadd.f32 %v1380_v28, %v475_v43  ;;  %vm479_vm5 = vmor %vm477_vm11, %vm478_vm2 }
 0x12b   :  { %v445_v30 = vsel %vm2039_vm9, %v444_v45, %v440_v41  ;;  %v1384_v13 = vpop.eup %1383  ;;  %v556_v1 = vadd.f32 %v1382_v38, %v555_v49  ;;  %v523_v62 = vand.u32 2147483648, %v2051_v44  ;;  %v404_v46 = vor.u32 1.1754944e-38, %v403_v31  ;;  %vm559_vm6 = vmor %vm557_vm12, %vm558_vm3 }
 0x12c   :  { %1385 = vrcp.f32 %v2082_v10  ;;  %v513_v45 = vmul.f32 %v1384_v13, %v2051_v44  ;;  %v480_v7 = vsel %vm479_vm5, %v1380_v28, %v476_v47  ;;  %v400_v48 = vsel %vm2091_vm4, %v2034_v19, %v396_v2  ;;  %v883_v47 = vld [vmem:[%s2681_s3 + $0x70] sm:$0xff] }
 0x12d   :  { %v303_v60 = vadd.f32 0.001143296, %v2028_v8  ;;  %v560_v51 = vsel %vm559_vm6, %v1382_v38, %v556_v1  ;;  %v485_v50 = vsel %vm2059_vm14, %v484_v20, %v480_v7  ;;  %v446_v11 = vmul.f32 %v445_v30, %v1907_v21 }
 0x12e   :  { %v262_v35 = vmul.f32 3.8918573e-05, %v1630_v23  ;;  %v565_v15 = vsel %vm2077_vm1, %v564_v57, %v560_v51  ;;  %v514_v61 = vsub.f32 1.0, %v513_v45  ;;  %vm517_vm7 = vweird.f32 %v2051_v44 }
 0x12f   :  { %vm402_vm8 = vcmp.eq.f32.partialorder %v401_v6, 8.507059e+37  ;;  %v566_v19 = vmul.f32 %v565_v15, %v2000_v0  ;;  %vm2117_vm9 = vcmp.eq.f32.partialorder %v521_v37, 8.507059e+37  ;;  %v524_v28 = vor.u32 1.1754944e-38, %v523_v62 }
 0x130   :  { %v405_v38 = vsel %vm402_vm8, %v404_v46, %v400_v48  ;;  %v515_v21 = vmul.f32 %v1384_v13, %v514_v61  ;;  %vm518_vm10 = vweird.f32 %v1384_v13  ;;  %v486_v33 = vmul.f32 %v485_v50, %v1990_v55 }
 0x131   :  { %v304_v53 = vmul.f32 %v303_v60, %v1690_v26  ;;  %v1320_v29 = vclamps-f32 %v566_v19, 1.0  ;;  %v1317_v16 = vclamps-f32 %v446_v11, 1.0  ;;  %vm357_vm11 = vweird.f32 %v2082_v10  ;;  %vm519_vm12 = vmor %vm517_vm7, %vm518_vm10 }
 0x132   :  { %v1386_v36 = vpop.eup %1385  ;;  %v263_v56 = vadd.f32 0.001143296, %v262_v35  ;;  %v516_v6 = vadd.f32 %v1384_v13, %v515_v21  ;;  %v406_v0 = vmul.f32 %v405_v38, %v1865_v34  ;;  %v361_v27 = vand.u32 2147483647, %v2082_v10 }
 0x133   :  { %v353_v58 = vmul.f32 %v1386_v36, %v2082_v10  ;;  %v818_v20 = vadd.f32 1.0, %v1320_v29  ;;  %v363_v55 = vand.u32 2147483648, %v2082_v10  ;;  %v305_v39 = vadd.f32 0.014752088, %v304_v53 }
 0x134   :  { %v264_v42 = vmul.f32 %v263_v56, %v1630_v23  ;;  %v520_v41 = vsel %vm519_vm12, %v1384_v13, %v516_v6  ;;  %v1318_v40 = vclamps-f32 %v486_v33, 1.0  ;;  %v222_v54 = vmul.f32 3.8918573e-05, %v1617_v9 }
 0x135   :  { %v354_v31 = vsub.f32 1.0, %v353_v58  ;;  %v834_v34 = vmul.f32 %v818_v20, %v1904_v5  ;;  %v525_v63 = vsel %vm2117_vm9, %v524_v28, %v520_v41  ;;  %vm358_vm13 = vweird.f32 %v1386_v36 }
 0x136   :  { %v306_v43 = vmul.f32 %v305_v39, %v1690_v26  ;;  %v526_v44 = vmul.f32 %v525_v63, %v1997_v3  ;;  %v265_v2 = vadd.f32 0.014752088, %v264_v42  ;;  %v223_v57 = vadd.f32 0.001143296, %v222_v54  ;;  %vm359_vm15 = vmor %vm357_vm11, %vm358_vm13 }
 0x137   :  { %v355_v49 = vmul.f32 %v1386_v36, %v354_v31  ;;  %849 = vmatpush.msrb.mxu1 %v834_v34  ;;  %v1316_v37 = vclamps-f32 %v406_v0, 1.0  ;;  %vm2137_vm14 = vcmp.eq.f32.partialorder %v361_v27, 8.507059e+37  ;;  %v182_v5 = vmul.f32 3.8918573e-05, %v1588_v52  ;;  %v2736_v31 = vld [vmem:[#allocation11_spill] sm:$0xff] }
 0x138   :  { %v307_v30 = vadd.f32 0.112945676, %v306_v43  ;;  %v1319_v24 = vclamps-f32 %v526_v44, 1.0  ;;  %v266_v1 = vmul.f32 %v265_v2, %v1630_v23  ;;  %v224_v62 = vmul.f32 %v223_v57, %v1617_v9 }
 0x139   :  { %v356_v13 = vadd.f32 %v1386_v36, %v355_v49  ;;  %v816_v46 = vadd.f32 1.0, %v1318_v40  ;;  %v364_v3 = vor.u32 1.1754944e-38, %v363_v55  ;;  %v183_v7 = vadd.f32 0.001143296, %v182_v5 }
 0x13a   :  { %v308_v45 = vmul.f32 %v307_v30, %v1690_v26  ;;  %v817_v48 = vadd.f32 1.0, %v1319_v24  ;;  %v267_v51 = vadd.f32 0.112945676, %v266_v1  ;;  %v225_v50 = vadd.f32 0.014752088, %v224_v62  ;;  %v882_v62 = vld [vmem:[%s2681_s3 + $0x68] sm:$0xff] }
 0x13b   :  { %v360_v60 = vsel %vm359_vm15, %v1386_v36, %v356_v13  ;;  %v815_v11 = vadd.f32 1.0, %v1317_v16  ;;  %v184_v61 = vmul.f32 %v183_v7, %v1588_v52  ;;  %v143_v38 = vmul.f32 0.5, %v1715_v14 }
 0x13c   :  { %v365_v35 = vsel %vm2137_vm14, %v364_v3, %v360_v60  ;;  %v309_v15 = vadd.f32 0.4994258, %v308_v45  ;;  %v833_v19 = vmul.f32 %v817_v48, %v1868_v4  ;;  %v268_v8 = vmul.f32 %v267_v51, %v1630_v23 }
 0x13d   :  { %v366_v10 = vmul.f32 %v365_v35, %v1862_v32  ;;  %v226_v28 = vmul.f32 %v225_v50, %v1617_v9  ;;  %v814_v21 = vadd.f32 1.0, %v1316_v37  ;;  %v185_v53 = vadd.f32 0.014752088, %v184_v61  ;;  %v884_v37 = vld [vmem:[%s2681_s3 + $0x78] sm:$0xff]  ;;  %v881_v50 = vld [vmem:[%s2681_s3 + $0x60] sm:$0xff] }
 0x13e   :  { %v310_v33 = vmul.f32 %v309_v15, %v1690_v26  ;;  %850 = vmatpush.msrb.mxu1 %v833_v19  ;;  %v832_v36 = vmul.f32 %v816_v46, %v1855_v18  ;;  %v269_v16 = vadd.f32 0.4994258, %v268_v8  ;;  %v297_v4 = vmul.f32 %v1852_v12, %v1690_v26  ;;  %886 = vmatpush.msrb.mxu2 %v884_v37  ;;  %v2737_v46 = vld [vmem:[#allocation7_spill] sm:$0xff]  ;;  %v880_v8 = vld [vmem:[%s2681_s3 + $0x58] sm:$0xff] }
 0x13f   :  { %v1315_v29 = vclamps-f32 %v366_v10, 1.0  ;;  %v227_v56 = vadd.f32 0.112945676, %v226_v28  ;;  %v142_v32 = vmul.f32 0.5, %v1682_v17  ;;  %v186_v0 = vmul.f32 %v185_v53, %v1588_v52 }
 0x140   :  { %v2161_v6 = vadd.f32 1.0, %v310_v33  ;;  %851 = vmatpush.msrb.mxu1 %v832_v36  ;;  %v831_v14 = vmul.f32 %v815_v11, %v143_v38  ;;  %v270_v27 = vmul.f32 %v269_v16, %v1630_v23  ;;  %v216_v18 = vadd.f32 0.05243302, %v1688_v22  ;;  %887 = vmatpush.msrb.mxu2 %v883_v47 }
 0x141   :  { %v813_v58 = vadd.f32 1.0, %v1315_v29  ;;  %v228_v20 = vmul.f32 %v227_v56, %v1617_v9  ;;  %v257_v55 = vmul.f32 %v1761_v25, %v1630_v23  ;;  %v141_v12 = vmul.f32 0.5, %v1659_v59  ;;  %v879_v29 = vld [vmem:[%s2681_s3 + $0x50] sm:$0xff] }
 0x142   :  { %1387 = vrcp.f32 %v2161_v6  ;;  %852 = vmatpush.msrb.mxu1 %v831_v14  ;;  %v830_v17 = vmul.f32 %v814_v21, %v142_v32  ;;  %v2171_v39 = vadd.f32 1.0, %v270_v27  ;;  %v187_v41 = vadd.f32 0.112945676, %v186_v0  ;;  %888 = vmatpush.msrb.mxu2 %v882_v62  ;;  %v2738_v21 = vld [vmem:[#allocation10_spill] sm:$0xff]  ;;  %v2739_v32 = vld [vmem:[#allocation8_spill] sm:$0xff] }
 0x143   :  { %v229_v42 = vadd.f32 0.4994258, %v228_v20  ;;  %v298_v40 = vadd.f32 0.18741608, %v297_v4  ;;  %v177_v54 = vmul.f32 %v2736_v31, %v1588_v52  ;;  %v829_v34 = vmul.f32 %v813_v58, %v141_v12  ;;  %v878_v27 = vld [vmem:[%s2681_s3 + $0x48] sm:$0xff]  ;;  %v2740_v31 = vld [vmem:[#allocation9_spill] sm:$0xff] }
 0x144   :  { %853 = vmatpush.msrb.mxu1 %v830_v17  ;;  %1389 = vrcp.f32 %v2171_v39  ;;  %v217_v22 = vmul.f32 %v216_v18, %v1617_v9  ;;  %v258_v25 = vadd.f32 0.18741608, %v257_v55  ;;  %v188_v63 = vmul.f32 %v187_v41, %v1588_v52  ;;  %889 = vmatpush.msrb.mxu2 %v881_v50  ;;  %v877_v41 = vld [vmem:[%s2681_s3 + $0x40] sm:$0xff]  ;;  %v2742_v50 = vld [vmem:[#allocation4_spill] sm:$0xff] }
 0x145   :  { %v230_v59 = vmul.f32 %v229_v42, %v1617_v9  ;;  %v299_v44 = vmul.f32 %v298_v40, %v1690_v26  ;;  %v178_v30 = vadd.f32 0.18741608, %v177_v54  ;;  %v2196_v3 = vmul.f32 0.5, %v2737_v46  ;;  %v874_v46 = vld [vmem:[%s2681_s3 + $0x28] sm:$0xff] }
 0x146   :  { %854 = vmatpush.msrb.mxu1 %v829_v34  ;;  %v189_v2 = vadd.f32 0.4994258, %v188_v63  ;;  %v218_v5 = vadd.f32 0.18741608, %v217_v22  ;;  %v259_v24 = vmul.f32 %v258_v25, %v1630_v23  ;;  %v323_v7 = vand.u32 2147483648, %v2161_v6  ;;  %890 = vmatpush.msrb.mxu2 %v880_v8  ;;  %v2741_v25 = vld [vmem:[#allocation6_spill] sm:$0xff] }
 0x147   :  { %v2180_v49 = vadd.f32 1.0, %v230_v59  ;;  %v300_v45 = vadd.f32 1.1283791, %v299_v44  ;;  %v321_v60 = vand.u32 2147483647, %v2161_v6  ;;  %v179_v11 = vmul.f32 %v178_v30, %v1588_v52  ;;  %v876_v44 = vld [vmem:[%s2681_s3 + $0x38] sm:$0xff] }
 0x148   :  { %v1388_v43 = vpop.eup %1387  ;;  %v190_v1 = vmul.f32 %v189_v2, %v1588_v52  ;;  %v219_v35 = vmul.f32 %v218_v5, %v1617_v9  ;;  %v260_v15 = vadd.f32 1.1283791, %v259_v24  ;;  %vm317_vm1 = vweird.f32 %v2161_v6  ;;  %891 = vmatpush.msrb.mxu2 %v879_v29  ;;  %v842_v29 = vld [vmem:[%s2682_s1] sm:$0xff] }
 0x149   :  { %v313_v57 = vmul.f32 %v1388_v43, %v2161_v6  ;;  %1391 = vrcp.f32 %v2180_v49  ;;  %vm318_vm0 = vweird.f32 %v1388_v43  ;;  %v283_v10 = vand.u32 2147483648, %v2171_v39 }
 0x14a   :  { %v1390_v26 = vpop.eup %1389  ;;  %v2201_v51 = vadd.f32 1.0, %v190_v1  ;;  %vm319_vm2 = vmor %vm317_vm1, %vm318_vm0  ;;  %v324_v52 = vor.u32 1.1754944e-38, %v323_v7  ;;  %v281_v9 = vand.u32 2147483647, %v2171_v39  ;;  %v301_v33 = vmul.f32 %v300_v45, %v2738_v21  ;;  %892 = vmatpush.msrb.mxu2 %v878_v27  ;;  %v921_v27 = vld [vmem:[%s2683_s4 + $0x70] sm:$0xff] }
 0x14b   :  { %v314_v13 = vsub.f32 1.0, %v313_v57  ;;  %v273_v48 = vmul.f32 %v1390_v26, %v2171_v39  ;;  %vm278_vm3 = vweird.f32 %v1390_v26  ;;  %vm322_vm4 = vcmp.eq.f32.partialorder %v321_v60, 8.507059e+37  ;;  %v873_v60 = vld [vmem:[%s2681_s3 + $0x20] sm:$0xff] }
 0x14c   :  { %1393 = vrcp.f32 %v2201_v51  ;;  %v220_v16 = vadd.f32 1.1283791, %v219_v35  ;;  %vm277_vm5 = vweird.f32 %v2171_v39  ;;  %v261_v6 = vmul.f32 %v260_v15, %v2739_v32  ;;  %893 = vmatpush.msrb.mxu2 %v877_v41  ;;  %v2743_v15 = vld [vmem:[#allocation5_spill] sm:$0xff]  ;;  %v931_v32 = vld [vmem:[%s2683_s4 + $0xc0] sm:$0xff] }
 0x14d   :  { %v315_v23 = vmul.f32 %v1388_v43, %v314_v13  ;;  %v274_v61 = vsub.f32 1.0, %v273_v48  ;;  %vm279_vm6 = vmor %vm277_vm5, %vm278_vm3  ;;  %v284_v14 = vor.u32 1.1754944e-38, %v283_v10  ;;  %vm282_vm7 = vcmp.eq.f32.partialorder %v281_v9, 8.507059e+37  ;;  %v2744_v9 = vld [vmem:[#allocation3_spill] sm:$0xff]  ;;  %v969_v41 = vld [vmem:[%s2684_s5 + $0xf0] sm:$0xff] }
 0x14e   :  { %v241_v18 = vand.u32 2147483647, %v2180_v49  ;;  %v243_v55 = vand.u32 2147483648, %v2180_v49  ;;  %v180_v40 = vadd.f32 1.1283791, %v179_v11  ;;  %v140_v54 = vmul.f32 0.5, %v2740_v31  ;;  %894 = vmatpush.msrb.mxu2 %v876_v44  ;;  %971 = vmatpush.msra.mxu3 %v969_v41 }
 0x14f   :  { %v316_v19 = vadd.f32 %v1388_v43, %v315_v23  ;;  %v1392_v28 = vpop.eup %1391  ;;  %v275_v38 = vmul.f32 %v1390_v26, %v274_v61  ;;  %v221_v59 = vmul.f32 %v220_v16, %v2741_v25  ;;  %vm237_vm9 = vweird.f32 %v2180_v49  ;;  %v937_v16 = vld [vmem:[%s2683_s4 + $0xf0] sm:$0xff] }
 0x150   :  { %v233_v36 = vmul.f32 %v1392_v28, %v2180_v49  ;;  %vm238_vm8 = vweird.f32 %v1392_v28  ;;  %vm242_vm11 = vcmp.eq.f32.partialorder %v241_v18, 8.507059e+37  ;;  %v244_v57 = vor.u32 1.1754944e-38, %v243_v55  ;;  %v875_v49 = vld [vmem:[%s2681_s3 + $0x30] sm:$0xff]  ;;  %v915_v55 = vld [vmem:[%s2683_s4 + $0x40] sm:$0xff] }
 0x151   :  { %v320_v53 = vsel %vm319_vm2, %v1388_v43, %v316_v19  ;;  %v276_v4 = vadd.f32 %v1390_v26, %v275_v38  ;;  %vm239_vm10 = vmor %vm237_vm9, %vm238_vm8  ;;  %v201_v5 = vand.u32 2147483647, %v2201_v51  ;;  %v203_v24 = vand.u32 2147483648, %v2201_v51  ;;  %895 = vmatpush.msrb.mxu2 %v875_v49  ;;  %v870_v38 = vld [vmem:[%s2681_s3 + $0x8] sm:$0xff]  ;;  %v917_v18 = vld [vmem:[%s2683_s4 + $0x50] sm:$0xff] }
 0x152   :  { %v325_v56 = vsel %vm322_vm4, %v324_v52, %v320_v53  ;;  %v234_v58 = vsub.f32 1.0, %v233_v36  ;;  %v1394_v12 = vpop.eup %1393  ;;  %vm197_vm13 = vweird.f32 %v2201_v51  ;;  %v181_v11 = vmul.f32 %v180_v40, %v2742_v50  ;;  %v869_v53 = vld [vmem:[%s2681_s3] sm:$0xff]  ;;  %v965_v31 = vld [vmem:[%s2684_s5 + $0xd0] sm:$0xff] }
 0x153   :  { %v326_v0 = vmul.f32 %v325_v56, %v301_v33  ;;  %v280_v20 = vsel %vm279_vm6, %v1390_v26, %v276_v4  ;;  %v193_v22 = vmul.f32 %v1394_v12, %v2201_v51  ;;  %vm198_vm12 = vweird.f32 %v1394_v12  ;;  %896 = vmatpush.msrb.mxu2 %v874_v46  ;;  %v872_v51 = vld [vmem:[%s2681_s3 + $0x18] sm:$0xff]  ;;  %v935_v56 = vld [vmem:[%s2683_s4 + $0xe0] sm:$0xff]  ;;  %v933_v4 = vld [vmem:[%s2683_s4 + $0xd0] sm:$0xff] }
 0x154   :  { %v285_v39 = vsel %vm282_vm7, %v284_v14, %v280_v20  ;;  %v235_v42 = vmul.f32 %v1392_v28, %v234_v58  ;;  %vm199_vm14 = vmor %vm197_vm13, %vm198_vm12  ;;  %v204_v23 = vor.u32 1.1754944e-38, %v203_v24  ;;  %vm202_vm15 = vcmp.eq.f32.partialorder %v201_v5, 8.507059e+37  ;;  %v925_v14 = vld [vmem:[%s2683_s4 + $0x90] sm:$0xff]  ;;  %v923_v58 = vld [vmem:[%s2683_s4 + $0x80] sm:$0xff] }
 0x155   :  { %v1314_v17 = vclamps-f32 %v326_v0, 1.0  ;;  %v286_v34 = vmul.f32 %v285_v39, %v261_v6  ;;  %v194_v37 = vsub.f32 1.0, %v193_v22  ;;  %v138_v61 = vmul.f32 0.5, %v2743_v15  ;;  %897 = vmatpush.msrb.mxu2 %v873_v60  ;;  %v929_v6 = vld [vmem:[%s2683_s4 + $0xb0] sm:$0xff]  ;;  %v927_v0 = vld [vmem:[%s2683_s4 + $0xa0] sm:$0xff]  ;;  %v968_v22 = vld [vmem:[%s2684_s5 + $0xe8] sm:$0xff] }
 0x156   :  { %v236_v43 = vadd.f32 %v1392_v28, %v235_v42  ;;  %v137_v21 = vmul.f32 0.5, %v2744_v9  ;;  %v919_v20 = vld [vmem:[%s2683_s4 + $0x60] sm:$0xff]  ;;  %v909_v39 = vld [vmem:[%s2683_s4 + $0x10] sm:$0xff]  ;;  %v956_v24 = vld [vmem:[%s2684_s5 + $0x88] sm:$0xff] }
 0x157   :  { %v812_v63 = vadd.f32 1.0, %v1314_v17  ;;  %v1313_v2 = vclamps-f32 %v286_v34, 1.0  ;;  %v195_v1 = vmul.f32 %v1394_v12, %v194_v37  ;;  %898 = vmatpush.msrb.mxu2 %v872_v51  ;;  %v911_v17 = vld [vmem:[%s2683_s4 + $0x20] sm:$0xff]  ;;  %v970_v34 = vld [vmem:[%s2684_s5 + $0xf8] sm:$0xff]  ;;  %v961_v25 = vld [vmem:[%s2684_s5 + $0xb0] sm:$0xff] }
 0x158   :  { %v240_v30 = vsel %vm239_vm10, %v1392_v28, %v236_v43  ;;  %v871_v28 = vld [vmem:[%s2681_s3 + $0x10] sm:$0xff]  ;;  %v907_v42 = vld [vmem:[%s2683_s4] sm:$0xff]  ;;  %v964_v43 = vld [vmem:[%s2684_s5 + $0xc8] sm:$0xff] }
 0x159   :  { %v828_v47 = vmul.f32 %v812_v63, %v140_v54  ;;  %v811_v26 = vadd.f32 1.0, %v1313_v2  ;;  %v245_v13 = vsel %vm242_vm11, %v244_v57, %v240_v30  ;;  %v196_v7 = vadd.f32 %v1394_v12, %v195_v1  ;;  %899 = vmatpush.msrb.mxu2 %v871_v28  ;;  %v967_v40 = vld [vmem:[%s2684_s5 + $0xe0] sm:$0xff]  ;;  %v957_v44 = vld [vmem:[%s2684_s5 + $0x90] sm:$0xff]  ;;  %v962_v2 = vld [vmem:[%s2684_s5 + $0xb8] sm:$0xff] }
 0x15a   :  { %v246_v62 = vmul.f32 %v245_v13, %v221_v59  ;;  %972 = vmatpush.msra.mxu3 %v967_v40  ;;  %v963_v54 = vld [vmem:[%s2684_s5 + $0xc0] sm:$0xff]  ;;  %v966_v59 = vld [vmem:[%s2684_s5 + $0xd8] sm:$0xff]  ;;  %v960_v37 = vld [vmem:[%s2684_s5 + $0xa8] sm:$0xff] }
 0x15b   :  { %855 = vmatpush.msrb.mxu1 %v828_v47  ;;  %v827_v45 = vmul.f32 %v811_v26, %v2196_v3  ;;  %v200_v35 = vsel %vm199_vm14, %v1394_v12, %v196_v7  ;;  %900 = vmatpush.msrb.mxu2 %v870_v38  ;;  %v913_v12 = vld [vmem:[%s2683_s4 + $0x30] sm:$0xff]  ;;  %v959_v63 = vld [vmem:[%s2684_s5 + $0xa0] sm:$0xff]  ;;  %v958_v30 = vld [vmem:[%s2684_s5 + $0x98] sm:$0xff] }
 0x15c   :  { %v1312_v48 = vclamps-f32 %v246_v62, 1.0  ;;  %v205_v19 = vsel %vm202_vm15, %v204_v23, %v200_v35  ;;  %973 = vmatpush.msra.mxu3 %v965_v31  ;;  %v955_v57 = vld [vmem:[%s2684_s5 + $0x80] sm:$0xff]  ;;  %v953_v47 = vld [vmem:[%s2684_s5 + $0x70] sm:$0xff]  ;;  %v954_v26 = vld [vmem:[%s2684_s5 + $0x78] sm:$0xff] }
 0x15d   :  { %856 = vmatpush.msrb.mxu1 %v827_v45  ;;  %v206_v10 = vmul.f32 %v205_v19, %v181_v11  ;;  %901 = vmatpush.msrb.mxu2 %v869_v53  ;;  %v951_v5 = vld [vmem:[%s2684_s5 + $0x60] sm:$0xff]  ;;  %v949_v49 = vld [vmem:[%s2684_s5 + $0x50] sm:$0xff]  ;;  %v952_v1 = vld [vmem:[%s2684_s5 + $0x68] sm:$0xff] }
 0x15e   :  { %v810_v3 = vadd.f32 1.0, %v1312_v48  ;;  %974 = vmatpush.msra.mxu3 %v963_v54  ;;  %v947_v13 = vld [vmem:[%s2684_s5 + $0x40] sm:$0xff]  ;;  %v945_v62 = vld [vmem:[%s2684_s5 + $0x30] sm:$0xff]  ;;  %v950_v46 = vld [vmem:[%s2684_s5 + $0x58] sm:$0xff] }
 0x15f   :  { %v1311_v52 = vclamps-f32 %v206_v10, 1.0  ;;  %1011 = vmatpush.msra.mxu2 %v937_v16  ;;  %v943_v7 = vld [vmem:[%s2684_s5 + $0x20] sm:$0xff]  ;;  %v948_v48 = vld [vmem:[%s2684_s5 + $0x48] sm:$0xff]  ;;  %v941_v23 = vld [vmem:[%s2684_s5 + $0x10] sm:$0xff] }
 0x160   :  { %v826_v8 = vmul.f32 %v810_v3, %v138_v61  ;;  %975 = vmatpush.msra.mxu3 %v961_v25  ;;  %v946_v60 = vld [vmem:[%s2684_s5 + $0x38] sm:$0xff]  ;;  %v939_v50 = vld [vmem:[%s2684_s5] sm:$0xff]  ;;  %v944_v11 = vld [vmem:[%s2684_s5 + $0x28] sm:$0xff] }
 0x161   :  { %v809_v33 = vadd.f32 1.0, %v1311_v52  ;;  %1012 = vmatpush.msra.mxu2 %v935_v56  ;;  %v938_v35 = vld [vmem:[%s2683_s4 + $0xf8] sm:$0xff]  ;;  %v936_v15 = vld [vmem:[%s2683_s4 + $0xe8] sm:$0xff]  ;;  %v885_v56 = vld [vmem:[%s2680_s8 + $0x1] ss:$0 sm:$0xff] }
 0x162   :  { %857 = vmatpush.msrb.mxu1 %v826_v8  ;;  %976 = vmatpush.msra.mxu3 %v959_v63  ;;  %v934_v61 = vld [vmem:[%s2683_s4 + $0xd8] sm:$0xff]  ;;  %v932_v3 = vld [vmem:[%s2683_s4 + $0xc8] sm:$0xff] }
 0x163   :  { %v825_v36 = vmul.f32 %v809_v33, %v137_v21  ;;  %1013 = vmatpush.msra.mxu2 %v933_v4  ;;  %v930_v19 = vld [vmem:[%s2683_s4 + $0xb8] sm:$0xff]  ;;  %v928_v51 = vld [vmem:[%s2683_s4 + $0xa8] sm:$0xff] }
 0x164   :  { %977 = vmatpush.msra.mxu3 %v957_v44  ;;  %v926_v10 = vld [vmem:[%s2683_s4 + $0x98] sm:$0xff]  ;;  %v924_v8 = vld [vmem:[%s2683_s4 + $0x88] sm:$0xff] }
 0x165   :  { %858 = vmatpush.msrb.mxu1 %v825_v36  ;;  %1014 = vmatpush.msra.mxu2 %v931_v32  ;;  %v922_v28 = vld [vmem:[%s2683_s4 + $0x78] sm:$0xff]  ;;  %v920_v52 = vld [vmem:[%s2683_s4 + $0x68] sm:$0xff] }
 0x166   :  { %859 = vmatmul.f32.vlgmr.msrb.gmra.mxu1 %v842_v29  ;;  %978 = vmatpush.msra.mxu3 %v955_v57  ;;  %v918_v38 = vld [vmem:[%s2683_s4 + $0x58] sm:$0xff]  ;;  %v916_v21 = vld [vmem:[%s2683_s4 + $0x48] sm:$0xff] }
 0x167   :  { %1015 = vmatpush.msra.mxu2 %v929_v6  ;;  %991 = vmatpush.msra.mxu1 %v970_v34  ;;  %v942_v9 = vld [vmem:[%s2684_s5 + $0x18] sm:$0xff]  ;;  %v940_v33 = vld [vmem:[%s2684_s5 + $0x8] sm:$0xff] }
 0x168   :  { %979 = vmatpush.msra.mxu3 %v953_v47  ;;  %v914_v53 = vld [vmem:[%s2683_s4 + $0x38] sm:$0xff]  ;;  %v912_v36 = vld [vmem:[%s2683_s4 + $0x28] sm:$0xff] }
 0x169   :  { %1016 = vmatpush.msra.mxu2 %v927_v0  ;;  %992 = vmatpush.msra.mxu1 %v968_v22  ;;  %v910_v29 = vld [vmem:[%s2683_s4 + $0x18] sm:$0xff]  ;;  %v908_v16 = vld [vmem:[%s2683_s4 + $0x8] sm:$0xff] }
 0x16a   :  { %980 = vmatpush.msra.mxu3 %v951_v5  ;;  %v1327_v6 = vld [vmem:[%s2680_s8 + $0x2] ss:$8 sm:$0x3] }
 0x16b   :  { %1017 = vmatpush.msra.mxu2 %v925_v14  ;;  %993 = vmatpush.msra.mxu1 %v966_v59  ;;  %v1054_v0 = vperm.slane %v1327_v6, 0  ;;  %v1055_v59 = vperm.slane %v1327_v6, 1 }
 0x16c   :  { %981 = vmatpush.msra.mxu3 %v949_v49 }
 0x16d   :  { %1018 = vmatpush.msra.mxu2 %v923_v58  ;;  %994 = vmatpush.msra.mxu1 %v964_v43 }
 0x16e   :  { %982 = vmatpush.msra.mxu3 %v947_v13 }
 0x16f   :  { %1019 = vmatpush.msra.mxu2 %v921_v27  ;;  %995 = vmatpush.msra.mxu1 %v962_v2 }
 0x170   :  { %983 = vmatpush.msra.mxu3 %v945_v62 }
 0x171   :  { %1020 = vmatpush.msra.mxu2 %v919_v20  ;;  %996 = vmatpush.msra.mxu1 %v960_v37 }
 0x172   :  { %984 = vmatpush.msra.mxu3 %v943_v7 }
 0x173   :  { %1021 = vmatpush.msra.mxu2 %v917_v18  ;;  %997 = vmatpush.msra.mxu1 %v958_v30 }
 0x174   :  { %985 = vmatpush.msra.mxu3 %v941_v23 }
 0x175   :  { %1022 = vmatpush.msra.mxu2 %v915_v55  ;;  %998 = vmatpush.msra.mxu1 %v956_v24 }
 0x176   :  { %986 = vmatpush.msra.mxu3 %v939_v50 }
 0x177   :  { %1023 = vmatpush.msra.mxu2 %v913_v12  ;;  %999 = vmatpush.msra.mxu1 %v954_v26 }
 0x178   :  { %1031 = vmatpush.msrb.mxu3 %v938_v35 }
 0x179   :  { %1024 = vmatpush.msra.mxu2 %v911_v17  ;;  %1000 = vmatpush.msra.mxu1 %v952_v1 }
 0x17a   :  { %1032 = vmatpush.msrb.mxu3 %v936_v15 }
 0x17b   :  { %1025 = vmatpush.msra.mxu2 %v909_v39  ;;  %1001 = vmatpush.msra.mxu1 %v950_v46 }
 0x17c   :  { %1033 = vmatpush.msrb.mxu3 %v934_v61 }
 0x17d   :  { %1026 = vmatpush.msra.mxu2 %v907_v42  ;;  %1002 = vmatpush.msra.mxu1 %v948_v48 }
 0x17e   :  { %1034 = vmatpush.msrb.mxu3 %v932_v3 }
 0x17f   :  { %1003 = vmatpush.msra.mxu1 %v946_v60 }
 0x180   :  { %1035 = vmatpush.msrb.mxu3 %v930_v19 }
 0x181   :  { %1004 = vmatpush.msra.mxu1 %v944_v11 }
 0x182   :  { %1036 = vmatpush.msrb.mxu3 %v928_v51  ;;  %v1163_v51 = vld [vmem:[%s2686_s6 + $0x78] sm:$0xff] }
 0x183   :  { %1005 = vmatpush.msra.mxu1 %v942_v9  ;;  %v1161_v9 = vld [vmem:[%s2686_s6 + $0x68] sm:$0xff] }
 0x184   :  { %1037 = vmatpush.msrb.mxu3 %v926_v10  ;;  %v1162_v10 = vld [vmem:[%s2686_s6 + $0x70] sm:$0xff] }
 0x185   :  { %1006 = vmatpush.msra.mxu1 %v940_v33 }
 0x186   :  { %1038 = vmatpush.msrb.mxu3 %v924_v8 }
 0x187   :  { %1181 = vmatpush.msrb.mxu1 %v1163_v51 }
 0x188   :  { %1039 = vmatpush.msrb.mxu3 %v922_v28 }
 0x189   :  { %1182 = vmatpush.msrb.mxu1 %v1162_v10  ;;  %v1166_v10 = vld [vmem:[%s2686_s6 + $0x90] sm:$0xff] }
 0x18a   :  { %1040 = vmatpush.msrb.mxu3 %v920_v52 }
 0x18b   :  { %1183 = vmatpush.msrb.mxu1 %v1161_v9 }
 0x18c   :  { %1041 = vmatpush.msrb.mxu3 %v918_v38  ;;  %v1179_v38 = vld [vmem:[%s2686_s6 + $0xf8] sm:$0xff] }
 0x18e   :  { %1042 = vmatpush.msrb.mxu3 %v916_v21  ;;  %v1178_v21 = vld [vmem:[%s2686_s6 + $0xf0] sm:$0xff] }
 0x190   :  { %1043 = vmatpush.msrb.mxu3 %v914_v53  ;;  %v1177_v53 = vld [vmem:[%s2686_s6 + $0xe8] sm:$0xff] }
 0x192   :  { %1044 = vmatpush.msrb.mxu3 %v912_v36 }
 0x194   :  { %1045 = vmatpush.msrb.mxu3 %v910_v29  ;;  %v1160_v29 = vld [vmem:[%s2686_s6 + $0x60] sm:$0xff] }
 0x195   :  { %1184 = vmatpush.msrb.mxu1 %v1160_v29  ;;  %v1180_v29 = vld [vmem:[%s2680_s8 + $0x3] ss:$0 sm:$0xff] }
 0x196   :  { %1046 = vmatpush.msrb.mxu3 %v908_v16 }
 0x1e3   :  { %v860_v45 = vpop.f32.mrf.mxu1 }
 0x1e4   :  { %902 = vmatmul.f32.vlgmr.msrb.gmra.mxu2 %v860_v45 }
 0x1e5   :  { %1201 = vmatpush.msrb.mxu2 %v1179_v38 }
 0x1e7   :  { %1202 = vmatpush.msrb.mxu2 %v1178_v21  ;;  %v1148_v21 = vld [vmem:[%s2686_s6] sm:$0xff] }
 0x1e9   :  { %1203 = vmatpush.msrb.mxu2 %v1177_v53 }
 0x1ec   :  { %1027 = vmatmul.f32.vlgmr.msra.gmra.mxu2 %v860_v45 }
 0x267   :  { %v903_v4 = vpop.f32.mrf.mxu2 }
 0x268   :  { %v904_v32 = vadd.f32 %v903_v4, %v885_v56 }
 0x26a   :  { %906 = vst [vmem:[%s2685_s9] sm:$0xff] %v904_v32  ;;  %987 = vmatmul.f32.vlgmr.msra.gmra.mxu3 %v904_v32  ;;  %1007 = vmatmul.f32.vlgmr.msra.gmra.mxu1 %v904_v32  ;;  %v1176_v32 = vld [vmem:[%s2686_s6 + $0xe0] sm:$0xff] }
 0x26b   :  { %1204 = vmatpush.msrb.mxu2 %v1176_v32 }
 0x26f   :  { %v1028_v14 = vpop.f32.mrf.mxu2 }
 0x272   :  { %1047 = vmatmul.f32.vlgmr.msrb.gmra.mxu3 %v860_v45 }
 0x2e7   :  { %v1008_v34 = vpop.f32.mrf.mxu1 }
 0x2ed   :  { %v988_v58 = vpop.f32.mrf.mxu3 }
 0x2ee   :  { %v1029_v27 = vadd.f32 %v1028_v14, %v988_v58 }
 0x2f0   :  { %v2471_v20 = vadd.f32 %v1054_v0, %v1029_v27  ;;  %v1159_v0 = vld [vmem:[%s2686_s6 + $0x58] sm:$0xff] }
 0x2f1   :  { %v1175_v27 = vld [vmem:[%s2686_s6 + $0xd8] sm:$0xff]  ;;  %1185 = vmatpush.msrb.mxu1 %v1159_v0 }
 0x2f2   :  { %v2474_v18 = vmul.f32 0.70710677, %v2471_v20  ;;  %1205 = vmatpush.msrb.mxu2 %v1175_v27 }
 0x2f4   :  { %v1064_v55 = vmul.f32 %v2474_v18, %v2474_v18 }
 0x2f5   :  { %v1048_v25 = vpop.f32.mrf.mxu3 }
 0x2f6   :  { %v1065_v12 = vmin.f32 %v1064_v55, 16.0  ;;  %v1049_v43 = vadd.f32 %v1048_v25, %v1008_v34  ;;  %v1156_v25 = vld [vmem:[%s2686_s6 + $0x40] sm:$0xff] }
 0x2f8   :  { %v1077_v17 = vmul.f32 3.8918573e-05, %v1065_v12  ;;  %v1066_v40 = vmul.f32 2.1237322e-06, %v1065_v12  ;;  %v2478_v2 = vadd.f32 %v1055_v59, %v1049_v43  ;;  %v1155_v43 = vld [vmem:[%s2686_s6 + $0x38] sm:$0xff] }
 0x2fa   :  { %v1078_v39 = vadd.f32 0.001143296, %v1077_v17  ;;  %v1067_v22 = vadd.f32 0.00028619796, %v1066_v40  ;;  %v2481_v47 = vmul.f32 0.70710677, %v2478_v2 }
 0x2fb   :  { %v1158_v17 = vld [vmem:[%s2686_s6 + $0x50] sm:$0xff] }
 0x2fc   :  { %v1079_v42 = vmul.f32 %v1078_v39, %v1065_v12  ;;  %v1068_v57 = vmul.f32 %v1067_v22, %v1065_v12  ;;  %v1104_v5 = vmul.f32 %v2481_v47, %v2481_v47  ;;  %1186 = vmatpush.msrb.mxu1 %v1158_v17 }
 0x2fe   :  { %v1080_v41 = vadd.f32 0.014752088, %v1079_v42  ;;  %v1069_v24 = vadd.f32 0.0036580483, %v1068_v57  ;;  %v2488_v49 = vmin.f32 %v1104_v5, 16.0  ;;  %v1154_v5 = vld [vmem:[%s2686_s6 + $0x30] sm:$0xff] }
 0x300   :  { %v1081_v31 = vmul.f32 %v1080_v41, %v1065_v12  ;;  %v1070_v26 = vmul.f32 %v1069_v24, %v1065_v12  ;;  %v1106_v13 = vmul.f32 2.1237322e-06, %v2488_v49  ;;  %v1117_v1 = vmul.f32 3.8918573e-05, %v2488_v49  ;;  %v1174_v41 = vld [vmem:[%s2686_s6 + $0xd0] sm:$0xff] }
 0x301   :  { %1206 = vmatpush.msrb.mxu2 %v1174_v41  ;;  %v1170_v24 = vld [vmem:[%s2686_s6 + $0xb0] sm:$0xff] }
 0x302   :  { %v1082_v54 = vadd.f32 0.112945676, %v1081_v31  ;;  %v1107_v62 = vadd.f32 0.00028619796, %v1106_v13  ;;  %v1118_v46 = vadd.f32 0.001143296, %v1117_v1 }
 0x303   :  { %v1071_v7 = vadd.f32 0.05243302, %v1070_v26  ;;  %v1157_v31 = vld [vmem:[%s2686_s6 + $0x48] sm:$0xff] }
 0x304   :  { %v1083_v63 = vmul.f32 %v1082_v54, %v1065_v12  ;;  %v1108_v23 = vmul.f32 %v1107_v62, %v2488_v49  ;;  %v1119_v60 = vmul.f32 %v1118_v46, %v2488_v49  ;;  %v1173_v54 = vld [vmem:[%s2686_s6 + $0xc8] sm:$0xff]  ;;  %1187 = vmatpush.msrb.mxu1 %v1157_v31 }
 0x305   :  { %v1072_v35 = vmul.f32 %v1071_v7, %v1065_v12  ;;  %1207 = vmatpush.msrb.mxu2 %v1173_v54  ;;  %v1153_v13 = vld [vmem:[%s2686_s6 + $0x28] sm:$0xff]  ;;  %v1280_v54 = vld [vmem:[%s2687_s7 + $0x78] sm:$0xff] }
 0x306   :  { %v1084_v44 = vadd.f32 0.4994258, %v1083_v63  ;;  %v1120_v50 = vadd.f32 0.014752088, %v1119_v60  ;;  %v1109_v11 = vadd.f32 0.0036580483, %v1108_v23  ;;  %1188 = vmatpush.msrb.mxu1 %v1156_v25  ;;  %1282 = vmatpush.msra.mxu3 %v1280_v54 }
 0x307   :  { %v1073_v8 = vadd.f32 0.18741608, %v1072_v35  ;;  %v1172_v63 = vld [vmem:[%s2686_s6 + $0xc0] sm:$0xff]  ;;  %v1169_v62 = vld [vmem:[%s2686_s6 + $0xa8] sm:$0xff]  ;;  %v1167_v35 = vld [vmem:[%s2686_s6 + $0x98] sm:$0xff] }
 0x308   :  { %v1085_v37 = vmul.f32 %v1084_v44, %v1065_v12  ;;  %v1121_v61 = vmul.f32 %v1120_v50, %v2488_v49  ;;  %v1110_v19 = vmul.f32 %v1109_v11, %v2488_v49  ;;  %1208 = vmatpush.msrb.mxu2 %v1172_v63  ;;  %1189 = vmatpush.msrb.mxu1 %v1155_v43  ;;  %v1168_v23 = vld [vmem:[%s2686_s6 + $0xa0] sm:$0xff]  ;;  %v1151_v50 = vld [vmem:[%s2686_s6 + $0x18] sm:$0xff]  ;;  %v1278_v25 = vld [vmem:[%s2687_s7 + $0x68] sm:$0xff] }
 0x309   :  { %v1074_v16 = vmul.f32 %v1073_v8, %v1065_v12  ;;  %v1060_v8 = vmul.f32 0.5, %v2471_v20  ;;  %v1164_v20 = vld [vmem:[%s2686_s6 + $0x80] sm:$0xff] }
 0x30a   :  { %v2483_v30 = vadd.f32 1.0, %v1085_v37  ;;  %v1122_v3 = vadd.f32 0.112945676, %v1121_v61  ;;  %v1111_v36 = vadd.f32 0.05243302, %v1110_v19  ;;  %v1171_v37 = vld [vmem:[%s2686_s6 + $0xb8] sm:$0xff]  ;;  %1190 = vmatpush.msrb.mxu1 %v1154_v5 }
 0x30b   :  { %v1075_v39 = vadd.f32 1.1283791, %v1074_v16  ;;  %1209 = vmatpush.msrb.mxu2 %v1171_v37  ;;  %v1150_v19 = vld [vmem:[%s2686_s6 + $0x10] sm:$0xff]  ;;  %v1277_v43 = vld [vmem:[%s2687_s7 + $0x60] sm:$0xff]  ;;  %v1274_v5 = vld [vmem:[%s2687_s7 + $0x48] sm:$0xff] }
 0x30c   :  { %1395 = vrcp.f32 %v2483_v30  ;;  %v1123_v52 = vmul.f32 %v1122_v3, %v2488_v49  ;;  %v1098_v6 = vand.u32 2147483648, %v2483_v30  ;;  %vm1092_vm1 = vweird.f32 %v2483_v30  ;;  %1191 = vmatpush.msrb.mxu1 %v1153_v13  ;;  %v1272_v13 = vld [vmem:[%s2687_s7 + $0x38] sm:$0xff] }
 0x30d   :  { %v1096_v14 = vand.u32 2147483647, %v2483_v30  ;;  %v1112_v12 = vmul.f32 %v1111_v36, %v2488_v49  ;;  %v1076_v59 = vmul.f32 %v1075_v39, %v2474_v18  ;;  %1210 = vmatpush.msrb.mxu2 %v1170_v24 }
 0x30e   :  { %v1124_v33 = vadd.f32 0.4994258, %v1123_v52  ;;  %v1099_v40 = vor.u32 1.1754944e-38, %v1098_v6  ;;  %v1165_v52 = vld [vmem:[%s2686_s6 + $0x88] sm:$0xff] }
 0x30f   :  { %vm1097_vm3 = vcmp.eq.f32.partialorder %v1096_v14, 8.507059e+37  ;;  %v1113_v22 = vadd.f32 0.18741608, %v1112_v12  ;;  %1211 = vmatpush.msrb.mxu2 %v1169_v62 }
 0x310   :  { %v1125_v4 = vmul.f32 %v1124_v33, %v2488_v49  ;;  %v1061_v33 = vmul.f32 0.5, %v2478_v2 }
 0x311   :  { %1212 = vmatpush.msrb.mxu2 %v1168_v23 }
 0x312   :  { %v1396_v45 = vpop.eup %1395  ;;  %v2529_v58 = vadd.f32 1.0, %v1125_v4 }
 0x313   :  { %v1088_v48 = vmul.f32 %v1396_v45, %v2483_v30  ;;  %vm1093_vm0 = vweird.f32 %v1396_v45  ;;  %v1114_v30 = vmul.f32 %v1113_v22, %v2488_v49  ;;  %1213 = vmatpush.msrb.mxu2 %v1167_v35 }
 0x314   :  { %vm2534_vm2 = vmor %vm1092_vm1, %vm1093_vm0  ;;  %1397 = vrcp.f32 %v2529_v58  ;;  %v1138_v49 = vand.u32 2147483648, %v2529_v58  ;;  %v1136_v7 = vand.u32 2147483647, %v2529_v58  ;;  %vm1132_vm5 = vweird.f32 %v2529_v58 }
 0x315   :  { %v1089_v15 = vsub.f32 1.0, %v1088_v48  ;;  %v1115_v46 = vadd.f32 1.1283791, %v1114_v30  ;;  %v1152_v48 = vld [vmem:[%s2686_s6 + $0x20] sm:$0xff]  ;;  %1214 = vmatpush.msrb.mxu2 %v1166_v10 }
 0x316   :  { %v1139_v11 = vor.u32 1.1754944e-38, %v1138_v49  ;;  %1192 = vmatpush.msrb.mxu1 %v1152_v48  ;;  %vm1137_vm7 = vcmp.eq.f32.partialorder %v1136_v7, 8.507059e+37  ;;  %v1270_v7 = vld [vmem:[%s2687_s7 + $0x28] sm:$0xff] }
 0x317   :  { %v1090_v28 = vmul.f32 %v1396_v45, %v1089_v15  ;;  %v1116_v61 = vmul.f32 %v1115_v46, %v2481_v47  ;;  %v1149_v47 = vld [vmem:[%s2686_s6 + $0x8] sm:$0xff]  ;;  %1215 = vmatpush.msrb.mxu2 %v1165_v52  ;;  %v1271_v46 = vld [vmem:[%s2687_s7 + $0x30] sm:$0xff]  ;;  %v1265_v52 = vld [vmem:[%s2687_s7] sm:$0xff] }
 0x318   :  { %1193 = vmatpush.msrb.mxu1 %v1151_v50 }
 0x319   :  { %v1091_v56 = vadd.f32 %v1396_v45, %v1090_v28  ;;  %1216 = vmatpush.msrb.mxu2 %v1164_v20  ;;  %v1281_v20 = vld [vmem:[%s2680_s8 + $0x4] ss:$0 sm:$0xff] }
 0x31a   :  { %v1398_v44 = vpop.eup %1397  ;;  %1194 = vmatpush.msrb.mxu1 %v1150_v19 }
 0x31b   :  { %v1095_v42 = vsel %vm2534_vm2, %v1396_v45, %v1091_v56  ;;  %v1128_v18 = vmul.f32 %v1398_v44, %v2529_v58  ;;  %vm1133_vm4 = vweird.f32 %v1398_v44 }
 0x31c   :  { %v1100_v34 = vsel %vm1097_vm3, %v1099_v40, %v1095_v42  ;;  %vm1134_vm6 = vmor %vm1132_vm5, %vm1133_vm4  ;;  %1195 = vmatpush.msrb.mxu1 %v1149_v47 }
 0x31d   :  { %v1101_v57 = vmul.f32 %v1100_v34, %v1076_v59  ;;  %v1129_v26 = vsub.f32 1.0, %v1128_v18  ;;  %v1279_v34 = vld [vmem:[%s2687_s7 + $0x70] sm:$0xff] }
 0x31e   :  { %1196 = vmatpush.msrb.mxu1 %v1148_v21  ;;  %1283 = vmatpush.msra.mxu3 %v1279_v34  ;;  %v1275_v18 = vld [vmem:[%s2687_s7 + $0x50] sm:$0xff] }
 0x31f   :  { %v1328_v1 = vclamps-f32 %v1101_v57, 1.0  ;;  %v1130_v45 = vmul.f32 %v1398_v44, %v1129_v26  ;;  %v1276_v57 = vld [vmem:[%s2687_s7 + $0x58] sm:$0xff]  ;;  %v1273_v26 = vld [vmem:[%s2687_s7 + $0x40] sm:$0xff] }
 0x320   :  { %1284 = vmatpush.msra.mxu3 %v1278_v25 }
 0x321   :  { %v1131_v60 = vadd.f32 %v1398_v44, %v1130_v45  ;;  %v1144_v15 = vadd.f32 1.0, %v1328_v1 }
 0x322   :  { %1285 = vmatpush.msra.mxu3 %v1277_v43 }
 0x323   :  { %v1135_v3 = vsel %vm1134_vm6, %v1398_v44, %v1131_v60  ;;  %v1146_v38 = vmul.f32 %v1144_v15, %v1060_v8  ;;  %v1268_v15 = vld [vmem:[%s2687_s7 + $0x18] sm:$0xff] }
 0x324   :  { %v1140_v51 = vsel %vm1137_vm7, %v1139_v11, %v1135_v3  ;;  %1286 = vmatpush.msra.mxu3 %v1276_v57  ;;  %v1269_v11 = vld [vmem:[%s2687_s7 + $0x20] sm:$0xff] }
 0x325   :  { %v1141_v28 = vmul.f32 %v1140_v51, %v1116_v61  ;;  %1197 = vmatmul.f32.vlgmr.msrb.gmra.mxu1 %v1146_v38  ;;  %v1267_v51 = vld [vmem:[%s2687_s7 + $0x10] sm:$0xff] }
 0x326   :  { %1287 = vmatpush.msra.mxu3 %v1275_v18 }
 0x327   :  { %v1329_v9 = vclamps-f32 %v1141_v28, 1.0  ;;  %v1266_v28 = vld [vmem:[%s2687_s7 + $0x8] sm:$0xff] }
 0x328   :  { %1288 = vmatpush.msra.mxu3 %v1274_v5 }
 0x329   :  { %v1145_v53 = vadd.f32 1.0, %v1329_v9 }
 0x32a   :  { %1289 = vmatpush.msra.mxu3 %v1273_v26 }
 0x32b   :  { %v1147_v36 = vmul.f32 %v1145_v53, %v1061_v33 }
 0x32c   :  { %1290 = vmatpush.msra.mxu3 %v1272_v13 }
 0x32d   :  { %1217 = vmatmul.f32.vlgmr.msrb.gmra.mxu2 %v1147_v36 }
 0x32e   :  { %1291 = vmatpush.msra.mxu3 %v1271_v46 }
 0x330   :  { %1292 = vmatpush.msra.mxu3 %v1270_v7 }
 0x332   :  { %1293 = vmatpush.msra.mxu3 %v1269_v11 }
 0x334   :  { %1294 = vmatpush.msra.mxu3 %v1268_v15 }
 0x336   :  { %1295 = vmatpush.msra.mxu3 %v1267_v51 }
 0x338   :  { %1296 = vmatpush.msra.mxu3 %v1266_v28 }
 0x33a   :  { %1297 = vmatpush.msra.mxu3 %v1265_v52 }
 0x3a2   :  { %v1198_v16 = vpop.f32.mrf.mxu1 }
 0x3a3   :  { %v1199_v56 = vadd.f32 %v1198_v16, %v1180_v29 }
 0x3b0   :  { %v1218_v4 = vpop.f32.mrf.mxu2 }
 0x3b1   :  { %v2620_v32 = vadd.f32 %v1218_v4, %v1199_v56 }
 0x3b3   :  { %v1222_v6 = vmul.f32 0.70710677, %v2620_v32  ;;  %v1221_v38 = vmul.f32 0.5, %v2620_v32 }
 0x3b5   :  { %v1223_v0 = vmul.f32 %v1222_v6, %v1222_v6 }
 0x3b7   :  { %v1224_v2 = vmin.f32 %v1223_v0, 16.0 }
 0x3b9   :  { %v1225_v14 = vmul.f32 2.1237322e-06, %v1224_v2  ;;  %v1236_v58 = vmul.f32 3.8918573e-05, %v1224_v2 }
 0x3bb   :  { %v1226_v27 = vadd.f32 0.00028619796, %v1225_v14  ;;  %v1237_v55 = vadd.f32 0.001143296, %v1236_v58 }
 0x3bd   :  { %v1227_v12 = vmul.f32 %v1226_v27, %v1224_v2  ;;  %v1238_v17 = vmul.f32 %v1237_v55, %v1224_v2 }
 0x3bf   :  { %v1239_v39 = vadd.f32 0.014752088, %v1238_v17  ;;  %v1228_v42 = vadd.f32 0.0036580483, %v1227_v12 }
 0x3c1   :  { %v1240_v41 = vmul.f32 %v1239_v39, %v1224_v2  ;;  %v1229_v31 = vmul.f32 %v1228_v42, %v1224_v2 }
 0x3c3   :  { %v1241_v40 = vadd.f32 0.112945676, %v1240_v41  ;;  %v1230_v63 = vadd.f32 0.05243302, %v1229_v31 }
 0x3c5   :  { %v1242_v22 = vmul.f32 %v1241_v40, %v1224_v2  ;;  %v1231_v30 = vmul.f32 %v1230_v63, %v1224_v2 }
 0x3c7   :  { %v1243_v59 = vadd.f32 0.4994258, %v1242_v22  ;;  %v1232_v24 = vadd.f32 0.18741608, %v1231_v30 }
 0x3c9   :  { %v1244_v44 = vmul.f32 %v1243_v59, %v1224_v2  ;;  %v1233_v49 = vmul.f32 %v1232_v24, %v1224_v2 }
 0x3cb   :  { %v1245_v37 = vadd.f32 1.0, %v1244_v44  ;;  %v1234_v23 = vadd.f32 1.1283791, %v1233_v49 }
 0x3cd   :  { %1399 = vrcp.f32 %v1245_v37  ;;  %v1257_v48 = vand.u32 2147483648, %v1245_v37  ;;  %v1255_v50 = vand.u32 2147483647, %v1245_v37  ;;  %vm1251_vm9 = vweird.f32 %v1245_v37 }
 0x3ce   :  { %v1235_v3 = vmul.f32 %v1234_v23, %v1222_v6 }
 0x3cf   :  { %v1258_v61 = vor.u32 1.1754944e-38, %v1257_v48  ;;  %vm1256_vm11 = vcmp.eq.f32.partialorder %v1255_v50, 8.507059e+37 }
 0x3d3   :  { %v1400_v1 = vpop.eup %1399 }
 0x3d4   :  { %v1247_v62 = vmul.f32 %v1400_v1, %v1245_v37  ;;  %vm1252_vm8 = vweird.f32 %v1400_v1 }
 0x3d5   :  { %vm1253_vm10 = vmor %vm1251_vm9, %vm1252_vm8 }
 0x3d6   :  { %v1248_v45 = vsub.f32 1.0, %v1247_v62 }
 0x3d8   :  { %v1249_v60 = vmul.f32 %v1400_v1, %v1248_v45 }
 0x3da   :  { %v1250_v35 = vadd.f32 %v1400_v1, %v1249_v60 }
 0x3dc   :  { %v1254_v19 = vsel %vm1253_vm10, %v1400_v1, %v1250_v35 }
 0x3dd   :  { %v1259_v10 = vsel %vm1256_vm11, %v1258_v61, %v1254_v19 }
 0x3de   :  { %v1260_v8 = vmul.f32 %v1259_v10, %v1235_v3 }
 0x3e0   :  { %v1330_v47 = vclamps-f32 %v1260_v8, 1.0 }
 0x3e2   :  { %v1263_v9 = vadd.f32 1.0, %v1330_v47 }
 0x3e4   :  { %v1264_v21 = vmul.f32 %v1263_v9, %v1221_v38 }
 0x3e6   :  { %1298 = vmatmul.f32.vlgmr.msra.gmra.mxu3 %v1264_v21 }
 0x469   :  { %v1299_v33 = vpop.f32.mrf.mxu3 }
 0x46a   :  { %v1300_v53 = vadd.f32 %v1299_v33, %v1281_v20 }
 0x46c   :  { %1302 = vst [vmem:[%s2688_s10] sm:$0xff] %v1300_v53 }

</bundles_post_ra>
